<compile_context>
chip_gen: v7x
topology: tpu7x:2x2x1
jax: 0.10.0
libtpu: 0.0.40
codegen_flags: <defaults>
</compile_context>

<pallas_src>
import functools
import math

import jax
import jax.numpy as jnp
from jax import lax
from jax.experimental import pallas as pl
from jax.experimental.pallas import tpu as pltpu


# ----------------------------- in-kernel helpers -----------------------------

def _layernorm(x, w, b, eps=1e-5):
    # PyTorch nn.LayerNorm semantics: biased variance, eps inside sqrt, f32 stats.
    mean = jnp.mean(x, axis=-1, keepdims=True)
    var = jnp.mean(jnp.square(x - mean), axis=-1, keepdims=True)
    return (x - mean) * lax.rsqrt(var + eps) * w + b


def _gelu_new(x):
    c = math.sqrt(2.0 / math.pi)
    return 0.5 * x * (1.0 + jnp.tanh(c * (x + 0.044715 * x * x * x)))


# ------------------------------ Pallas kernel --------------------------------

def gpt2_kernel(x_ref, pos_ref,
                ln1w_ref, ln1b_ref, caw_ref, cab_ref, cpw_ref, cpb_ref,
                ln2w_ref, ln2b_ref, fcw_ref, fcb_ref, mpw_ref, mpb_ref,
                lnfw_ref, lnfb_ref,
                o_ref, res_ref,
                *, n_head, kv_tile):
    """One (batch, layer) grid step. Residual stream stays in `res_ref` across L."""
    layer = pl.program_id(1)
    n_layers = pl.num_programs(1)

    # Layer 0: initialize the VMEM-resident residual stream with wte + wpe (fused add).
    @pl.when(layer == 0)
    def _():
        res_ref[...] = x_ref[...] + pos_ref[...]

    x = res_ref[...]                                   # (S, E) f32 residual
    S, E = x.shape
    H = n_head
    D = E // H
    TK = kv_tile
    nk = S // TK

    # ---------------- attention branch ----------------
    h = _layernorm(x, ln1w_ref[...], ln1b_ref[...])                       # f32
    qkv = jnp.dot(h.astype(jnp.bfloat16), caw_ref[...],
                  preferred_element_type=jnp.float32) + cab_ref[...]      # (S, 3E) f32
    q = qkv[:, 0:E]          # 1/sqrt(D) already folded into the q weight/bias
    k = qkv[:, E:2 * E]
    v = qkv[:, 2 * E:3 * E]

    # Head-major (H, S, D) tensors.
    # TODO(synk): at D=64 (real GPT-2) process heads two-at-a-time (128-lane dense)
    # instead of D-wide lane slices; at this toy shape nothing is lane-dense anyway.
    qh = jnp.stack([q[:, i * D:(i + 1) * D] for i in range(H)], axis=0
                   ).astype(jnp.bfloat16)
    kh = jnp.stack([k[:, i * D:(i + 1) * D] for i in range(H)], axis=0
                   ).astype(jnp.bfloat16)
    vh = jnp.stack([v[:, i * D:(i + 1) * D] for i in range(H)], axis=0
                   ).astype(jnp.bfloat16)

    # Flash-style online softmax over KV tiles: never materialize (H, S, S) scores.
    m_i = jnp.full((H, S, 1), -jnp.inf, jnp.float32)
    l_i = jnp.zeros((H, S, 1), jnp.float32)
    acc = jnp.zeros((H, S, D), jnp.float32)
    q_pos = lax.broadcasted_iota(jnp.int32, (S, TK), 0)
    k_pos = lax.broadcasted_iota(jnp.int32, (S, TK), 1)
    for j in range(nk):                                # static unroll; nk is small
        k_t = kh[:, j * TK:(j + 1) * TK, :]            # (H, TK, D) bf16
        v_t = vh[:, j * TK:(j + 1) * TK, :]
        s = jnp.einsum('hqd,hkd->hqk', qh, k_t,
                       preferred_element_type=jnp.float32)                # (H, S, TK)
        # Per-tile causal bias (HF GPT-2 masked_bias = -10000.0 convention).
        bias = jnp.where(q_pos >= k_pos + j * TK, 0.0, -10000.0)
        s = s + bias[None, :, :]
        m_new = jnp.maximum(m_i, jnp.max(s, axis=-1, keepdims=True))
        alpha = jnp.exp(m_i - m_new)
        p = jnp.exp(s - m_new)
        l_i = alpha * l_i + jnp.sum(p, axis=-1, keepdims=True)
        acc = alpha * acc + jnp.einsum('hqk,hkd->hqd', p.astype(jnp.bfloat16), v_t,
                                       preferred_element_type=jnp.float32)
        m_i = m_new
    ctx = (acc * pl.reciprocal(l_i, approx=True)).astype(jnp.bfloat16)    # (H, S, D)

    # Output projection with head-major weight (H, D, E), accumulated per head into a
    # single (S, E) f32 accumulator (no (H, S, E) intermediate, no H-way slab sum).
    attn = jnp.zeros((S, E), jnp.float32)
    for hh in range(H):
        attn = attn + jnp.dot(ctx[hh], cpw_ref[hh],
                              preferred_element_type=jnp.float32)
    attn = attn + cpb_ref[...]

    x = x + attn                            # residual 1

    # ------------------- MLP branch --------------------
    h2 = _layernorm(x, ln2w_ref[...], ln2b_ref[...])
    h2 = jnp.dot(h2.astype(jnp.bfloat16), fcw_ref[...],
                 preferred_element_type=jnp.float32) + fcb_ref[...]
    h2 = _gelu_new(h2)                                                    # f32 tanh
    h2 = jnp.dot(h2.astype(jnp.bfloat16), mpw_ref[...],
                 preferred_element_type=jnp.float32) + mpb_ref[...]

    y = x + h2                              # residual 2
    res_ref[...] = y                        # carry residual to the next layer (VMEM)

    # Last layer: fused final LayerNorm, single HBM write of the hidden states.
    @pl.when(layer == n_layers - 1)
    def _():
        o_ref[...] = _layernorm(y, lnfw_ref[...], lnfb_ref[...])


# ------------------------------ host-side glue --------------------------------

_STACKED = ("ln1_w", "ln1_b", "c_attn_w", "c_attn_b", "c_proj_w", "c_proj_b",
            "ln2_w", "ln2_b", "mlp_fc_w", "mlp_fc_b", "mlp_proj_w", "mlp_proj_b")


def gpt2_forward(input_ids, params, packed, *, kv_tile=None):
    """Full GPT2Model forward (all layers + final LN) in one pallas_call."""
    wte, wpe = params["wte"], params["wpe"]
    n_head = params["n_head"]
    B, S = input_ids.shape
    E = wte.shape[1]
    L = len(params["blocks"])
    if kv_tile is None:
        kv_tile = min(512, S)
    assert S % kv_tile == 0, "kv_tile must divide the sequence length"

    # Embedding gather (data-dependent HBM gather) stays outside the kernel.
    x = jnp.take(wte, input_ids, axis=0)                  # (B, S, E) f32
    pos = wpe[:S]                                         # (S, E)    f32

    def bmap(b, l):
        return (b, 0, 0)

    def cmap(b, l):
        return (0, 0)

    def wspec(arr):
        # Stacked per-layer weight: one layer slab per grid step, indexed by l.
        nd = arr.ndim
        return pl.BlockSpec((None,) + arr.shape[1:],
                            lambda b, l, _nd=nd: (l,) + (0,) * (_nd - 1))

    args = ([x, pos] + [packed[k] for k in _STACKED]
            + [packed["ln_f_w"], packed["ln_f_b"]])
    in_specs = ([pl.BlockSpec((None, S, E), bmap),        # x: resident across L
                 pl.BlockSpec((S, E), cmap)]              # wpe slice (constant)
                + [wspec(packed[k]) for k in _STACKED]
                + [pl.BlockSpec((1, E), cmap),            # ln_f weight (constant)
                   pl.BlockSpec((1, E), cmap)])           # ln_f bias   (constant)

    kernel = functools.partial(gpt2_kernel, n_head=n_head, kv_tile=kv_tile)
    return pl.pallas_call(
        kernel,
        out_shape=jax.ShapeDtypeStruct((B, S, E), jnp.float32),
        grid=(B, L),
        in_specs=in_specs,
        out_specs=pl.BlockSpec((None, S, E), bmap),       # same block across L
        scratch_shapes=[pltpu.VMEM((S, E), jnp.float32)],  # resident residual stream
        compiler_params=pltpu.CompilerParams(
            dimension_semantics=("parallel", "arbitrary"),
            vmem_limit_bytes=64 * 1024 * 1024),
    )(*args)


# ------------------------------ parameters ------------------------------------

def init_params(key, vocab_size, n_embed, n_context, n_layer, n_head):
    """f32, PyTorch-layout parameters (the reference model uses these directly)."""
    std = 0.02
    keys = jax.random.split(key, 2 + 4 * n_layer)
    wte = std * jax.random.normal(keys[0], (vocab_size, n_embed), jnp.float32)
    wpe = std * jax.random.normal(keys[1], (n_context, n_embed), jnp.float32)
    blocks = []
    for l in range(n_layer):
        k0, k1, k2, k3 = keys[2 + 4 * l: 2 + 4 * (l + 1)]
        blocks.append(dict(
            ln1_w=jnp.ones((n_embed,), jnp.float32),
            ln1_b=jnp.zeros((n_embed,), jnp.float32),
            c_attn_w=std * jax.random.normal(k0, (n_embed, 3 * n_embed), jnp.float32),
            c_attn_b=jnp.zeros((3 * n_embed,), jnp.float32),
            c_proj_w=std * jax.random.normal(k1, (n_embed, n_embed), jnp.float32),
            c_proj_b=jnp.zeros((n_embed,), jnp.float32),
            ln2_w=jnp.ones((n_embed,), jnp.float32),
            ln2_b=jnp.zeros((n_embed,), jnp.float32),
            mlp_fc_w=std * jax.random.normal(k2, (n_embed, 4 * n_embed), jnp.float32),
            mlp_fc_b=jnp.zeros((4 * n_embed,), jnp.float32),
            mlp_proj_w=std * jax.random.normal(k3, (4 * n_embed, n_embed), jnp.float32),
            mlp_proj_b=jnp.zeros((n_embed,), jnp.float32),
        ))
    return dict(wte=wte, wpe=wpe, blocks=blocks,
                ln_f_w=jnp.ones((n_embed,), jnp.float32),
                ln_f_b=jnp.zeros((n_embed,), jnp.float32),
                n_head=n_head)


def pack_kernel_params(params):
    """Stack per-layer weights along L, fold the attention scale, cast matmul
    weights to bf16, and store c_proj head-major (H, D, E)."""
    blocks = params["blocks"]
    E = params["wte"].shape[1]
    H = params["n_head"]
    D = E // H
    scale = 1.0 / math.sqrt(D)

    def stack(fn):
        return jnp.stack([fn(b) for b in blocks], axis=0)

    def fold_attn_w(b):
        w = b["c_attn_w"]
        return jnp.concatenate([w[:, :E] * scale, w[:, E:]], axis=1
                               ).astype(jnp.bfloat16)

    def fold_attn_b(b):
        bias = b["c_attn_b"]
        return jnp.concatenate([bias[:E] * scale, bias[E:]])[None, :]

    packed = dict(
        ln1_w=stack(lambda b: b["ln1_w"][None, :]),
        ln1_b=stack(lambda b: b["ln1_b"][None, :]),
        c_attn_w=stack(fold_attn_w),
        c_attn_b=stack(fold_attn_b),
        c_proj_w=stack(lambda b: b["c_proj_w"].reshape(H, D, E).astype(jnp.bfloat16)),
        c_proj_b=stack(lambda b: b["c_proj_b"][None, :]),
        ln2_w=stack(lambda b: b["ln2_w"][None, :]),
        ln2_b=stack(lambda b: b["ln2_b"][None, :]),
        mlp_fc_w=stack(lambda b: b["mlp_fc_w"].astype(jnp.bfloat16)),
        mlp_fc_b=stack(lambda b: b["mlp_fc_b"][None, :]),
        mlp_proj_w=stack(lambda b: b["mlp_proj_w"].astype(jnp.bfloat16)),
        mlp_proj_b=stack(lambda b: b["mlp_proj_b"][None, :]),
    )
    packed["ln_f_w"] = params["ln_f_w"][None, :]
    packed["ln_f_b"] = params["ln_f_b"][None, :]
    return packed


# --------------------------- pure-JAX reference (f32) --------------------------

def gpt2_reference(input_ids, params):
    wte, wpe = params["wte"], params["wpe"]
    B, S = input_ids.shape
    E = wte.shape[1]
    H = params["n_head"]
    D = E // H

    def ln(v, w, b):
        m = jnp.mean(v, -1, keepdims=True)
        var = jnp.mean((v - m) ** 2, -1, keepdims=True)
        return (v - m) / jnp.sqrt(var + 1e-5) * w + b

    x = jnp.take(wte, input_ids, axis=0) + wpe[:S][None]
    mask = jnp.tril(jnp.ones((S, S), bool))
    for blk in params["blocks"]:
        h = ln(x, blk["ln1_w"], blk["ln1_b"])
        qkv = h @ blk["c_attn_w"] + blk["c_attn_b"]
        q, k, v = jnp.split(qkv, 3, axis=-1)
        q = q.reshape(B, S, H, D).transpose(0, 2, 1, 3)
        k = k.reshape(B, S, H, D).transpose(0, 2, 1, 3)
        v = v.reshape(B, S, H, D).transpose(0, 2, 1, 3)
        w_ = jnp.einsum('bhqd,bhkd->bhqk', q, k) / math.sqrt(D)
        w_ = jnp.where(mask, w_, -10000.0)
        w_ = jax.nn.softmax(w_, axis=-1)
        ctx = jnp.einsum('bhqk,bhkd->bhqd', w_, v)
        ctx = ctx.transpose(0, 2, 1, 3).reshape(B, S, E)
        x = x + ctx @ blk["c_proj_w"] + blk["c_proj_b"]
        h2 = ln(x, blk["ln2_w"], blk["ln2_b"])
        h2 = _gelu_new(h2 @ blk["mlp_fc_w"] + blk["mlp_fc_b"])
        x = x + h2 @ blk["mlp_proj_w"] + blk["mlp_proj_b"]
    return ln(x, params["ln_f_w"], params["ln_f_b"])


# ----------------------------------- main -------------------------------------

if __name__ == "__main__":
    vocab_size = 128
    n_embed = 32
    n_context = 8
    n_layer = 2
    n_head = 4
    # dropout = 0.0 (eval semantics -> identity)

    batch = 2
    seq = 8

    key = jax.random.PRNGKey(0)
    k_ids, k_params = jax.random.split(key)
    input_ids = jax.random.randint(k_ids, (batch, seq), 0, vocab_size, dtype=jnp.int32)

    params = init_params(k_params, vocab_size, n_context=n_context,
                         n_embed=n_embed, n_layer=n_layer, n_head=n_head)
    packed = pack_kernel_params(params)

    # kv_tile=4 -> two KV tiles at S=8, so the online-softmax (flash) path with
    # multiple tiles is genuinely exercised and checked against the reference.
    out = gpt2_forward(input_ids, params, packed, kv_tile=4)
    out = jax.block_until_ready(out)
    assert out.shape == (batch, seq, n_embed)
    assert bool(jnp.all(jnp.isfinite(out)))

    # Correctness vs. pure-JAX f32 reference (kernel uses bf16 matmul operands and an
    # approx reciprocal in the softmax, so allow a loose tolerance).
    ref = gpt2_reference(input_ids, params)
    err = float(jnp.max(jnp.abs(out - ref)))
    assert err < 0.15, f"kernel/reference mismatch: max abs err = {err}"

    print("KERNEL_OK")
</pallas_src>

<mosaic_0001>
module attributes {stable_mosaic.version = 11 : i64} {
  func.func @gpt2_kernel(%arg0: i32, %arg1: i32, %arg2: memref<1x8x32xf32, #tpu.memory_space<vmem>>, %arg3: memref<8x32xf32, #tpu.memory_space<vmem>>, %arg4: memref<1x1x32xf32, #tpu.memory_space<vmem>>, %arg5: memref<1x1x32xf32, #tpu.memory_space<vmem>>, %arg6: memref<1x32x96xbf16, #tpu.memory_space<vmem>>, %arg7: memref<1x1x96xf32, #tpu.memory_space<vmem>>, %arg8: memref<1x4x8x32xbf16, #tpu.memory_space<vmem>>, %arg9: memref<1x1x32xf32, #tpu.memory_space<vmem>>, %arg10: memref<1x1x32xf32, #tpu.memory_space<vmem>>, %arg11: memref<1x1x32xf32, #tpu.memory_space<vmem>>, %arg12: memref<1x32x128xbf16, #tpu.memory_space<vmem>>, %arg13: memref<1x1x128xf32, #tpu.memory_space<vmem>>, %arg14: memref<1x128x32xbf16, #tpu.memory_space<vmem>>, %arg15: memref<1x1x32xf32, #tpu.memory_space<vmem>>, %arg16: memref<1x32xf32, #tpu.memory_space<vmem>>, %arg17: memref<1x32xf32, #tpu.memory_space<vmem>>, %arg18: memref<1x8x32xf32, #tpu.memory_space<vmem>>, %arg19: memref<8x32xf32, #tpu.memory_space<vmem>>) attributes {dimension_semantics = [#tpu.dimension_semantics<parallel>, #tpu.dimension_semantics<arbitrary>], iteration_bounds = array<i64: 2, 2>, scalar_prefetch = 0 : i64, scratch_operands = 1 : i64, tpu.core_type = #tpu.core_type<tc>, window_params = [{transform_indices = @transform_0, window_bounds = array<i64: 1, 8, 32>}, {pipeline_mode = #tpu.pipeline_mode<synchronous>, transform_indices = @transform_1, window_bounds = array<i64: 8, 32>}, {transform_indices = @transform_2, window_bounds = array<i64: 1, 1, 32>}, {transform_indices = @transform_3, window_bounds = array<i64: 1, 1, 32>}, {transform_indices = @transform_4, window_bounds = array<i64: 1, 32, 96>}, {transform_indices = @transform_5, window_bounds = array<i64: 1, 1, 96>}, {transform_indices = @transform_6, window_bounds = array<i64: 1, 4, 8, 32>}, {transform_indices = @transform_7, window_bounds = array<i64: 1, 1, 32>}, {transform_indices = @transform_8, window_bounds = array<i64: 1, 1, 32>}, {transform_indices = @transform_9, window_bounds = array<i64: 1, 1, 32>}, {transform_indices = @transform_10, window_bounds = array<i64: 1, 32, 128>}, {transform_indices = @transform_11, window_bounds = array<i64: 1, 1, 128>}, {transform_indices = @transform_12, window_bounds = array<i64: 1, 128, 32>}, {transform_indices = @transform_13, window_bounds = array<i64: 1, 1, 32>}, {pipeline_mode = #tpu.pipeline_mode<synchronous>, transform_indices = @transform_14, window_bounds = array<i64: 1, 32>}, {pipeline_mode = #tpu.pipeline_mode<synchronous>, transform_indices = @transform_15, window_bounds = array<i64: 1, 32>}, {transform_indices = @transform_16, window_bounds = array<i64: 1, 8, 32>}]} {
    %c0_i32 = arith.constant 0 : i32
    %0 = arith.cmpi eq, %arg1, %c0_i32 : i32
    %1 = arith.extui %0 : i1 to i32
    %c0_i32_0 = arith.constant 0 : i32
    %2 = arith.cmpi ne, %1, %c0_i32_0 : i32
    scf.if %2 {
      %c0_88 = arith.constant 0 : index
      %c0_89 = arith.constant 0 : index
      %c0_90 = arith.constant 0 : index
      %228 = vector.load %arg2[%c0_88, %c0_89, %c0_90] : memref<1x8x32xf32, #tpu.memory_space<vmem>>, vector<1x8x32xf32>
      %229 = vector.shape_cast %228 : vector<1x8x32xf32> to vector<8x32xf32>
      %c0_91 = arith.constant 0 : index
      %c0_92 = arith.constant 0 : index
      %230 = vector.load %arg3[%c0_91, %c0_92] : memref<8x32xf32, #tpu.memory_space<vmem>>, vector<8x32xf32>
      %231 = arith.addf %229, %230 : vector<8x32xf32>
      %c0_93 = arith.constant 0 : index
      %c0_94 = arith.constant 0 : index
      %232 = vector.load %arg19[%c0_93, %c0_94] : memref<8x32xf32, #tpu.memory_space<vmem>>, vector<8x32xf32>
      tpu.vector_store %arg19[%c0_93, %c0_94], %231 {strides = array<i32>} : memref<8x32xf32, #tpu.memory_space<vmem>>, vector<8x32xf32>,
    } else {
    }
    %c0 = arith.constant 0 : index
    %c0_1 = arith.constant 0 : index
    %3 = vector.load %arg19[%c0, %c0_1] : memref<8x32xf32, #tpu.memory_space<vmem>>, vector<8x32xf32>
    %c0_2 = arith.constant 0 : index
    %c0_3 = arith.constant 0 : index
    %c0_4 = arith.constant 0 : index
    %4 = vector.load %arg4[%c0_2, %c0_3, %c0_4] : memref<1x1x32xf32, #tpu.memory_space<vmem>>, vector<1x1x32xf32>
    %5 = vector.shape_cast %4 : vector<1x1x32xf32> to vector<1x32xf32>
    %c0_5 = arith.constant 0 : index
    %c0_6 = arith.constant 0 : index
    %c0_7 = arith.constant 0 : index
    %6 = vector.load %arg5[%c0_5, %c0_6, %c0_7] : memref<1x1x32xf32, #tpu.memory_space<vmem>>, vector<1x1x32xf32>
    %7 = vector.shape_cast %6 : vector<1x1x32xf32> to vector<1x32xf32>
    %cst = arith.constant dense<0.000000e+00> : vector<8xf32>
    %8 = vector.multi_reduction <add>, %3, %cst [1] : vector<8x32xf32> to vector<8xf32>
    %9 = vector.shape_cast %8 : vector<8xf32> to vector<8x1xf32>
    %cst_8 = arith.constant 3.200000e+01 : f32
    %10 = vector.broadcast %cst_8 : f32 to vector<8x1xf32>
    %11 = arith.divf %9, %10 : vector<8x1xf32>
    %12 = vector.broadcast %11 : vector<8x1xf32> to vector<8x32xf32>
    %13 = arith.subf %3, %12 : vector<8x32xf32>
    %14 = arith.mulf %13, %13 : vector<8x32xf32>
    %cst_9 = arith.constant dense<0.000000e+00> : vector<8xf32>
    %15 = vector.multi_reduction <add>, %14, %cst_9 [1] : vector<8x32xf32> to vector<8xf32>
    %16 = vector.shape_cast %15 : vector<8xf32> to vector<8x1xf32>
    %cst_10 = arith.constant 3.200000e+01 : f32
    %17 = vector.broadcast %cst_10 : f32 to vector<8x1xf32>
    %18 = arith.divf %16, %17 : vector<8x1xf32>
    %19 = vector.broadcast %11 : vector<8x1xf32> to vector<8x32xf32>
    %20 = arith.subf %3, %19 : vector<8x32xf32>
    %cst_11 = arith.constant 9.99999974E-6 : f32
    %21 = vector.broadcast %cst_11 : f32 to vector<8x1xf32>
    %22 = arith.addf %18, %21 : vector<8x1xf32>
    %23 = math.rsqrt %22 : vector<8x1xf32>
    %24 = vector.broadcast %23 : vector<8x1xf32> to vector<8x32xf32>
    %25 = arith.mulf %20, %24 : vector<8x32xf32>
    %26 = vector.broadcast %5 : vector<1x32xf32> to vector<8x32xf32>
    %27 = arith.mulf %25, %26 : vector<8x32xf32>
    %28 = vector.broadcast %7 : vector<1x32xf32> to vector<8x32xf32>
    %29 = arith.addf %27, %28 : vector<8x32xf32>
    %30 = arith.truncf %29 : vector<8x32xf32> to vector<8x32xbf16>
    %c0_12 = arith.constant 0 : index
    %c0_13 = arith.constant 0 : index
    %c0_14 = arith.constant 0 : index
    %31 = vector.load %arg6[%c0_12, %c0_13, %c0_14] : memref<1x32x96xbf16, #tpu.memory_space<vmem>>, vector<1x32x96xbf16>
    %32 = vector.shape_cast %31 : vector<1x32x96xbf16> to vector<32x96xbf16>
    %cst_15 = arith.constant dense<0.000000e+00> : vector<8x96xf32>
    %33 = tpu.matmul %30, %32, %cst_15 {dimension_numbers = #tpu.dot_dimension_numbers<[1], [0], [0], [1], [0, 0, 1, 1], [], []>} : vector<8x32xbf16>, vector<32x96xbf16>, vector<8x96xf32> -> vector<8x96xf32>
    %c0_16 = arith.constant 0 : index
    %c0_17 = arith.constant 0 : index
    %c0_18 = arith.constant 0 : index
    %34 = vector.load %arg7[%c0_16, %c0_17, %c0_18] : memref<1x1x96xf32, #tpu.memory_space<vmem>>, vector<1x1x96xf32>
    %35 = vector.shape_cast %34 : vector<1x1x96xf32> to vector<1x96xf32>
    %36 = vector.broadcast %35 : vector<1x96xf32> to vector<8x96xf32>
    %37 = arith.addf %33, %36 : vector<8x96xf32>
    %38 = vector.extract_strided_slice %37 {offsets = [0, 0], sizes = [8, 32], strides = [1, 1]} : vector<8x96xf32> to vector<8x32xf32>
    %39 = vector.extract_strided_slice %37 {offsets = [0, 32], sizes = [8, 32], strides = [1, 1]} : vector<8x96xf32> to vector<8x32xf32>
    %40 = vector.extract_strided_slice %37 {offsets = [0, 64], sizes = [8, 32], strides = [1, 1]} : vector<8x96xf32> to vector<8x32xf32>
    %41 = vector.extract_strided_slice %38 {offsets = [0, 0], sizes = [8, 8], strides = [1, 1]} : vector<8x32xf32> to vector<8x8xf32>
    %42 = vector.extract_strided_slice %38 {offsets = [0, 8], sizes = [8, 8], strides = [1, 1]} : vector<8x32xf32> to vector<8x8xf32>
    %43 = vector.extract_strided_slice %38 {offsets = [0, 16], sizes = [8, 8], strides = [1, 1]} : vector<8x32xf32> to vector<8x8xf32>
    %44 = vector.extract_strided_slice %38 {offsets = [0, 24], sizes = [8, 8], strides = [1, 1]} : vector<8x32xf32> to vector<8x8xf32>
    %45 = vector.shape_cast %41 : vector<8x8xf32> to vector<1x8x8xf32>
    %46 = vector.shape_cast %42 : vector<8x8xf32> to vector<1x8x8xf32>
    %47 = vector.shape_cast %43 : vector<8x8xf32> to vector<1x8x8xf32>
    %48 = vector.shape_cast %44 : vector<8x8xf32> to vector<1x8x8xf32>
    %49 = tpu.concatenate %45, %46, %47, %48 in 0 : vector<1x8x8xf32>, vector<1x8x8xf32>, vector<1x8x8xf32>, vector<1x8x8xf32> -> vector<4x8x8xf32>
    %50 = arith.truncf %49 : vector<4x8x8xf32> to vector<4x8x8xbf16>
    %51 = vector.extract_strided_slice %39 {offsets = [0, 0], sizes = [8, 8], strides = [1, 1]} : vector<8x32xf32> to vector<8x8xf32>
    %52 = vector.extract_strided_slice %39 {offsets = [0, 8], sizes = [8, 8], strides = [1, 1]} : vector<8x32xf32> to vector<8x8xf32>
    %53 = vector.extract_strided_slice %39 {offsets = [0, 16], sizes = [8, 8], strides = [1, 1]} : vector<8x32xf32> to vector<8x8xf32>
    %54 = vector.extract_strided_slice %39 {offsets = [0, 24], sizes = [8, 8], strides = [1, 1]} : vector<8x32xf32> to vector<8x8xf32>
    %55 = vector.shape_cast %51 : vector<8x8xf32> to vector<1x8x8xf32>
    %56 = vector.shape_cast %52 : vector<8x8xf32> to vector<1x8x8xf32>
    %57 = vector.shape_cast %53 : vector<8x8xf32> to vector<1x8x8xf32>
    %58 = vector.shape_cast %54 : vector<8x8xf32> to vector<1x8x8xf32>
    %59 = tpu.concatenate %55, %56, %57, %58 in 0 : vector<1x8x8xf32>, vector<1x8x8xf32>, vector<1x8x8xf32>, vector<1x8x8xf32> -> vector<4x8x8xf32>
    %60 = arith.truncf %59 : vector<4x8x8xf32> to vector<4x8x8xbf16>
    %61 = vector.extract_strided_slice %40 {offsets = [0, 0], sizes = [8, 8], strides = [1, 1]} : vector<8x32xf32> to vector<8x8xf32>
    %62 = vector.extract_strided_slice %40 {offsets = [0, 8], sizes = [8, 8], strides = [1, 1]} : vector<8x32xf32> to vector<8x8xf32>
    %63 = vector.extract_strided_slice %40 {offsets = [0, 16], sizes = [8, 8], strides = [1, 1]} : vector<8x32xf32> to vector<8x8xf32>
    %64 = vector.extract_strided_slice %40 {offsets = [0, 24], sizes = [8, 8], strides = [1, 1]} : vector<8x32xf32> to vector<8x8xf32>
    %65 = vector.shape_cast %61 : vector<8x8xf32> to vector<1x8x8xf32>
    %66 = vector.shape_cast %62 : vector<8x8xf32> to vector<1x8x8xf32>
    %67 = vector.shape_cast %63 : vector<8x8xf32> to vector<1x8x8xf32>
    %68 = vector.shape_cast %64 : vector<8x8xf32> to vector<1x8x8xf32>
    %69 = tpu.concatenate %65, %66, %67, %68 in 0 : vector<1x8x8xf32>, vector<1x8x8xf32>, vector<1x8x8xf32>, vector<1x8x8xf32> -> vector<4x8x8xf32>
    %70 = arith.truncf %69 : vector<4x8x8xf32> to vector<4x8x8xbf16>
    %cst_19 = arith.constant 0xFF800000 : f32
    %71 = vector.broadcast %cst_19 : f32 to vector<4x8x1xf32>
    %cst_20 = arith.constant 0.000000e+00 : f32
    %72 = vector.broadcast %cst_20 : f32 to vector<4x8x1xf32>
    %cst_21 = arith.constant 0.000000e+00 : f32
    %73 = vector.broadcast %cst_21 : f32 to vector<4x8x8xf32>
    %74 = tpu.iota {dimensions = array<i32: 0>} : vector<8x4xi32>
    %75 = tpu.iota {dimensions = array<i32: 1>} : vector<8x4xi32>
    %76 = vector.extract_strided_slice %60 {offsets = [0, 0, 0], sizes = [4, 4, 8], strides = [1, 1, 1]} : vector<4x8x8xbf16> to vector<4x4x8xbf16>
    %77 = vector.extract_strided_slice %70 {offsets = [0, 0, 0], sizes = [4, 4, 8], strides = [1, 1, 1]} : vector<4x8x8xbf16> to vector<4x4x8xbf16>
    "tpu.trace_start"() <{level = 10 : i32, message = "hqd,hkd->hqk"}> : () -> ()
    %cst_22 = arith.constant dense<0.000000e+00> : vector<4x8x4xf32>
    %78 = tpu.matmul %50, %76, %cst_22 {dimension_numbers = #tpu.dot_dimension_numbers<[2], [2], [1], [1], [0, 0, 0, 1, 1, 1], [0], [0]>} : vector<4x8x8xbf16>, vector<4x4x8xbf16>, vector<4x8x4xf32> -> vector<4x8x4xf32>
    "tpu.trace_stop"() : () -> ()
    %c0_i32_23 = arith.constant 0 : i32
    %79 = vector.broadcast %c0_i32_23 : i32 to vector<8x4xi32>
    %80 = arith.addi %75, %79 : vector<8x4xi32>
    %81 = arith.cmpi sge, %74, %80 : vector<8x4xi32>
    %cst_24 = arith.constant 0.000000e+00 : f32
    %cst_25 = arith.constant -1.000000e+04 : f32
    %82 = vector.broadcast %cst_24 : f32 to vector<8x4xf32>
    %83 = vector.broadcast %cst_25 : f32 to vector<8x4xf32>
    %84 = arith.select %81, %82, %83 : vector<8x4xi1>, vector<8x4xf32>
    %85 = vector.shape_cast %84 : vector<8x4xf32> to vector<1x8x4xf32>
    %86 = vector.broadcast %85 : vector<1x8x4xf32> to vector<4x8x4xf32>
    %87 = arith.addf %78, %86 : vector<4x8x4xf32>
    %cst_26 = arith.constant dense<0xFF800000> : vector<4x8xf32>
    %88 = vector.multi_reduction <maximumf>, %87, %cst_26 [2] : vector<4x8x4xf32> to vector<4x8xf32>
    %89 = vector.shape_cast %88 : vector<4x8xf32> to vector<4x8x1xf32>
    %90 = arith.maximumf %71, %89 : vector<4x8x1xf32>
    %91 = arith.subf %71, %90 : vector<4x8x1xf32>
    %92 = math.exp %91 : vector<4x8x1xf32>
    %93 = vector.broadcast %90 : vector<4x8x1xf32> to vector<4x8x4xf32>
    %94 = arith.subf %87, %93 : vector<4x8x4xf32>
    %95 = math.exp %94 : vector<4x8x4xf32>
    %96 = arith.mulf %92, %72 : vector<4x8x1xf32>
    %cst_27 = arith.constant dense<0.000000e+00> : vector<4x8xf32>
    %97 = vector.multi_reduction <add>, %95, %cst_27 [2] : vector<4x8x4xf32> to vector<4x8xf32>
    %98 = vector.shape_cast %97 : vector<4x8xf32> to vector<4x8x1xf32>
    %99 = arith.addf %96, %98 : vector<4x8x1xf32>
    %100 = vector.broadcast %92 : vector<4x8x1xf32> to vector<4x8x8xf32>
    %101 = arith.mulf %100, %73 : vector<4x8x8xf32>
    %102 = arith.truncf %95 : vector<4x8x4xf32> to vector<4x8x4xbf16>
    "tpu.trace_start"() <{level = 10 : i32, message = "hqk,hkd->hqd"}> : () -> ()
    %cst_28 = arith.constant dense<0.000000e+00> : vector<4x8x8xf32>
    %103 = tpu.matmul %102, %77, %cst_28 {dimension_numbers = #tpu.dot_dimension_numbers<[2], [1], [1], [2], [0, 0, 0, 1, 1, 2], [0], [0]>} : vector<4x8x4xbf16>, vector<4x4x8xbf16>, vector<4x8x8xf32> -> vector<4x8x8xf32>
    "tpu.trace_stop"() : () -> ()
    %104 = arith.addf %101, %103 : vector<4x8x8xf32>
    %105 = vector.extract_strided_slice %60 {offsets = [0, 4, 0], sizes = [4, 4, 8], strides = [1, 1, 1]} : vector<4x8x8xbf16> to vector<4x4x8xbf16>
    %106 = vector.extract_strided_slice %70 {offsets = [0, 4, 0], sizes = [4, 4, 8], strides = [1, 1, 1]} : vector<4x8x8xbf16> to vector<4x4x8xbf16>
    "tpu.trace_start"() <{level = 10 : i32, message = "hqd,hkd->hqk"}> : () -> ()
    %cst_29 = arith.constant dense<0.000000e+00> : vector<4x8x4xf32>
    %107 = tpu.matmul %50, %105, %cst_29 {dimension_numbers = #tpu.dot_dimension_numbers<[2], [2], [1], [1], [0, 0, 0, 1, 1, 1], [0], [0]>} : vector<4x8x8xbf16>, vector<4x4x8xbf16>, vector<4x8x4xf32> -> vector<4x8x4xf32>
    "tpu.trace_stop"() : () -> ()
    %c4_i32 = arith.constant 4 : i32
    %108 = vector.broadcast %c4_i32 : i32 to vector<8x4xi32>
    %109 = arith.addi %75, %108 : vector<8x4xi32>
    %110 = arith.cmpi sge, %74, %109 : vector<8x4xi32>
    %cst_30 = arith.constant 0.000000e+00 : f32
    %cst_31 = arith.constant -1.000000e+04 : f32
    %111 = vector.broadcast %cst_30 : f32 to vector<8x4xf32>
    %112 = vector.broadcast %cst_31 : f32 to vector<8x4xf32>
    %113 = arith.select %110, %111, %112 : vector<8x4xi1>, vector<8x4xf32>
    %114 = vector.shape_cast %113 : vector<8x4xf32> to vector<1x8x4xf32>
    %115 = vector.broadcast %114 : vector<1x8x4xf32> to vector<4x8x4xf32>
    %116 = arith.addf %107, %115 : vector<4x8x4xf32>
    %cst_32 = arith.constant dense<0xFF800000> : vector<4x8xf32>
    %117 = vector.multi_reduction <maximumf>, %116, %cst_32 [2] : vector<4x8x4xf32> to vector<4x8xf32>
    %118 = vector.shape_cast %117 : vector<4x8xf32> to vector<4x8x1xf32>
    %119 = arith.maximumf %90, %118 : vector<4x8x1xf32>
    %120 = arith.subf %90, %119 : vector<4x8x1xf32>
    %121 = math.exp %120 : vector<4x8x1xf32>
    %122 = vector.broadcast %119 : vector<4x8x1xf32> to vector<4x8x4xf32>
    %123 = arith.subf %116, %122 : vector<4x8x4xf32>
    %124 = math.exp %123 : vector<4x8x4xf32>
    %125 = arith.mulf %121, %99 : vector<4x8x1xf32>
    %cst_33 = arith.constant dense<0.000000e+00> : vector<4x8xf32>
    %126 = vector.multi_reduction <add>, %124, %cst_33 [2] : vector<4x8x4xf32> to vector<4x8xf32>
    %127 = vector.shape_cast %126 : vector<4x8xf32> to vector<4x8x1xf32>
    %128 = arith.addf %125, %127 : vector<4x8x1xf32>
    %129 = vector.broadcast %121 : vector<4x8x1xf32> to vector<4x8x8xf32>
    %130 = arith.mulf %129, %104 : vector<4x8x8xf32>
    %131 = arith.truncf %124 : vector<4x8x4xf32> to vector<4x8x4xbf16>
    "tpu.trace_start"() <{level = 10 : i32, message = "hqk,hkd->hqd"}> : () -> ()
    %cst_34 = arith.constant dense<0.000000e+00> : vector<4x8x8xf32>
    %132 = tpu.matmul %131, %106, %cst_34 {dimension_numbers = #tpu.dot_dimension_numbers<[2], [1], [1], [2], [0, 0, 0, 1, 1, 2], [0], [0]>} : vector<4x8x4xbf16>, vector<4x4x8xbf16>, vector<4x8x8xf32> -> vector<4x8x8xf32>
    "tpu.trace_stop"() : () -> ()
    %133 = arith.addf %130, %132 : vector<4x8x8xf32>
    %134 = tpu.reciprocal %128 {approx = true} : vector<4x8x1xf32> -> vector<4x8x1xf32>
    %135 = vector.broadcast %134 : vector<4x8x1xf32> to vector<4x8x8xf32>
    %136 = arith.mulf %133, %135 : vector<4x8x8xf32>
    %137 = arith.truncf %136 : vector<4x8x8xf32> to vector<4x8x8xbf16>
    %cst_35 = arith.constant 0.000000e+00 : f32
    %138 = vector.broadcast %cst_35 : f32 to vector<8x32xf32>
    %139 = vector.extract_strided_slice %137 {offsets = [0, 0, 0], sizes = [1, 8, 8], strides = [1, 1, 1]} : vector<4x8x8xbf16> to vector<1x8x8xbf16>
    %140 = vector.shape_cast %139 : vector<1x8x8xbf16> to vector<8x8xbf16>
    %c0_36 = arith.constant 0 : index
    %c0_37 = arith.constant 0 : index
    %c0_38 = arith.constant 0 : index
    %c0_39 = arith.constant 0 : index
    %141 = vector.load %arg8[%c0_36, %c0_37, %c0_38, %c0_39] : memref<1x4x8x32xbf16, #tpu.memory_space<vmem>>, vector<1x1x8x32xbf16>
    %142 = vector.shape_cast %141 : vector<1x1x8x32xbf16> to vector<8x32xbf16>
    %cst_40 = arith.constant dense<0.000000e+00> : vector<8x32xf32>
    %143 = tpu.matmul %140, %142, %cst_40 {dimension_numbers = #tpu.dot_dimension_numbers<[1], [0], [0], [1], [0, 0, 1, 1], [], []>} : vector<8x8xbf16>, vector<8x32xbf16>, vector<8x32xf32> -> vector<8x32xf32>
    %144 = arith.addf %138, %143 : vector<8x32xf32>
    %145 = vector.extract_strided_slice %137 {offsets = [1, 0, 0], sizes = [1, 8, 8], strides = [1, 1, 1]} : vector<4x8x8xbf16> to vector<1x8x8xbf16>
    %146 = vector.shape_cast %145 : vector<1x8x8xbf16> to vector<8x8xbf16>
    %c0_41 = arith.constant 0 : index
    %c1 = arith.constant 1 : index
    %c0_42 = arith.constant 0 : index
    %c0_43 = arith.constant 0 : index
    %147 = vector.load %arg8[%c0_41, %c1, %c0_42, %c0_43] : memref<1x4x8x32xbf16, #tpu.memory_space<vmem>>, vector<1x1x8x32xbf16>
    %148 = vector.shape_cast %147 : vector<1x1x8x32xbf16> to vector<8x32xbf16>
    %cst_44 = arith.constant dense<0.000000e+00> : vector<8x32xf32>
    %149 = tpu.matmul %146, %148, %cst_44 {dimension_numbers = #tpu.dot_dimension_numbers<[1], [0], [0], [1], [0, 0, 1, 1], [], []>} : vector<8x8xbf16>, vector<8x32xbf16>, vector<8x32xf32> -> vector<8x32xf32>
    %150 = arith.addf %144, %149 : vector<8x32xf32>
    %151 = vector.extract_strided_slice %137 {offsets = [2, 0, 0], sizes = [1, 8, 8], strides = [1, 1, 1]} : vector<4x8x8xbf16> to vector<1x8x8xbf16>
    %152 = vector.shape_cast %151 : vector<1x8x8xbf16> to vector<8x8xbf16>
    %c0_45 = arith.constant 0 : index
    %c2 = arith.constant 2 : index
    %c0_46 = arith.constant 0 : index
    %c0_47 = arith.constant 0 : index
    %153 = vector.load %arg8[%c0_45, %c2, %c0_46, %c0_47] : memref<1x4x8x32xbf16, #tpu.memory_space<vmem>>, vector<1x1x8x32xbf16>
    %154 = vector.shape_cast %153 : vector<1x1x8x32xbf16> to vector<8x32xbf16>
    %cst_48 = arith.constant dense<0.000000e+00> : vector<8x32xf32>
    %155 = tpu.matmul %152, %154, %cst_48 {dimension_numbers = #tpu.dot_dimension_numbers<[1], [0], [0], [1], [0, 0, 1, 1], [], []>} : vector<8x8xbf16>, vector<8x32xbf16>, vector<8x32xf32> -> vector<8x32xf32>
    %156 = arith.addf %150, %155 : vector<8x32xf32>
    %157 = vector.extract_strided_slice %137 {offsets = [3, 0, 0], sizes = [1, 8, 8], strides = [1, 1, 1]} : vector<4x8x8xbf16> to vector<1x8x8xbf16>
    %158 = vector.shape_cast %157 : vector<1x8x8xbf16> to vector<8x8xbf16>
    %c0_49 = arith.constant 0 : index
    %c3 = arith.constant 3 : index
    %c0_50 = arith.constant 0 : index
    %c0_51 = arith.constant 0 : index
    %159 = vector.load %arg8[%c0_49, %c3, %c0_50, %c0_51] : memref<1x4x8x32xbf16, #tpu.memory_space<vmem>>, vector<1x1x8x32xbf16>
    %160 = vector.shape_cast %159 : vector<1x1x8x32xbf16> to vector<8x32xbf16>
    %cst_52 = arith.constant dense<0.000000e+00> : vector<8x32xf32>
    %161 = tpu.matmul %158, %160, %cst_52 {dimension_numbers = #tpu.dot_dimension_numbers<[1], [0], [0], [1], [0, 0, 1, 1], [], []>} : vector<8x8xbf16>, vector<8x32xbf16>, vector<8x32xf32> -> vector<8x32xf32>
    %162 = arith.addf %156, %161 : vector<8x32xf32>
    %c0_53 = arith.constant 0 : index
    %c0_54 = arith.constant 0 : index
    %c0_55 = arith.constant 0 : index
    %163 = vector.load %arg9[%c0_53, %c0_54, %c0_55] : memref<1x1x32xf32, #tpu.memory_space<vmem>>, vector<1x1x32xf32>
    %164 = vector.shape_cast %163 : vector<1x1x32xf32> to vector<1x32xf32>
    %165 = vector.broadcast %164 : vector<1x32xf32> to vector<8x32xf32>
    %166 = arith.addf %162, %165 : vector<8x32xf32>
    %167 = arith.addf %3, %166 : vector<8x32xf32>
    %c0_56 = arith.constant 0 : index
    %c0_57 = arith.constant 0 : index
    %c0_58 = arith.constant 0 : index
    %168 = vector.load %arg10[%c0_56, %c0_57, %c0_58] : memref<1x1x32xf32, #tpu.memory_space<vmem>>, vector<1x1x32xf32>
    %169 = vector.shape_cast %168 : vector<1x1x32xf32> to vector<1x32xf32>
    %c0_59 = arith.constant 0 : index
    %c0_60 = arith.constant 0 : index
    %c0_61 = arith.constant 0 : index
    %170 = vector.load %arg11[%c0_59, %c0_60, %c0_61] : memref<1x1x32xf32, #tpu.memory_space<vmem>>, vector<1x1x32xf32>
    %171 = vector.shape_cast %170 : vector<1x1x32xf32> to vector<1x32xf32>
    %cst_62 = arith.constant dense<0.000000e+00> : vector<8xf32>
    %172 = vector.multi_reduction <add>, %167, %cst_62 [1] : vector<8x32xf32> to vector<8xf32>
    %173 = vector.shape_cast %172 : vector<8xf32> to vector<8x1xf32>
    %cst_63 = arith.constant 3.200000e+01 : f32
    %174 = vector.broadcast %cst_63 : f32 to vector<8x1xf32>
    %175 = arith.divf %173, %174 : vector<8x1xf32>
    %176 = vector.broadcast %175 : vector<8x1xf32> to vector<8x32xf32>
    %177 = arith.subf %167, %176 : vector<8x32xf32>
    %178 = arith.mulf %177, %177 : vector<8x32xf32>
    %cst_64 = arith.constant dense<0.000000e+00> : vector<8xf32>
    %179 = vector.multi_reduction <add>, %178, %cst_64 [1] : vector<8x32xf32> to vector<8xf32>
    %180 = vector.shape_cast %179 : vector<8xf32> to vector<8x1xf32>
    %cst_65 = arith.constant 3.200000e+01 : f32
    %181 = vector.broadcast %cst_65 : f32 to vector<8x1xf32>
    %182 = arith.divf %180, %181 : vector<8x1xf32>
    %183 = vector.broadcast %175 : vector<8x1xf32> to vector<8x32xf32>
    %184 = arith.subf %167, %183 : vector<8x32xf32>
    %cst_66 = arith.constant 9.99999974E-6 : f32
    %185 = vector.broadcast %cst_66 : f32 to vector<8x1xf32>
    %186 = arith.addf %182, %185 : vector<8x1xf32>
    %187 = math.rsqrt %186 : vector<8x1xf32>
    %188 = vector.broadcast %187 : vector<8x1xf32> to vector<8x32xf32>
    %189 = arith.mulf %184, %188 : vector<8x32xf32>
    %190 = vector.broadcast %169 : vector<1x32xf32> to vector<8x32xf32>
    %191 = arith.mulf %189, %190 : vector<8x32xf32>
    %192 = vector.broadcast %171 : vector<1x32xf32> to vector<8x32xf32>
    %193 = arith.addf %191, %192 : vector<8x32xf32>
    %194 = arith.truncf %193 : vector<8x32xf32> to vector<8x32xbf16>
    %c0_67 = arith.constant 0 : index
    %c0_68 = arith.constant 0 : index
    %c0_69 = arith.constant 0 : index
    %195 = vector.load %arg12[%c0_67, %c0_68, %c0_69] : memref<1x32x128xbf16, #tpu.memory_space<vmem>>, vector<1x32x128xbf16>
    %196 = vector.shape_cast %195 : vector<1x32x128xbf16> to vector<32x128xbf16>
    %cst_70 = arith.constant dense<0.000000e+00> : vector<8x128xf32>
    %197 = tpu.matmul %194, %196, %cst_70 {dimension_numbers = #tpu.dot_dimension_numbers<[1], [0], [0], [1], [0, 0, 1, 1], [], []>} : vector<8x32xbf16>, vector<32x128xbf16>, vector<8x128xf32> -> vector<8x128xf32>
    %c0_71 = arith.constant 0 : index
    %c0_72 = arith.constant 0 : index
    %c0_73 = arith.constant 0 : index
    %198 = vector.load %arg13[%c0_71, %c0_72, %c0_73] : memref<1x1x128xf32, #tpu.memory_space<vmem>>, vector<1x1x128xf32>
    %199 = vector.shape_cast %198 : vector<1x1x128xf32> to vector<1x128xf32>
    %200 = vector.broadcast %199 : vector<1x128xf32> to vector<8x128xf32>
    %201 = arith.addf %197, %200 : vector<8x128xf32>
    %cst_74 = arith.constant 5.000000e-01 : f32
    %202 = vector.broadcast %cst_74 : f32 to vector<8x128xf32>
    %203 = arith.mulf %202, %201 : vector<8x128xf32>
    %cst_75 = arith.constant 4.471500e-02 : f32
    %204 = vector.broadcast %cst_75 : f32 to vector<8x128xf32>
    %205 = arith.mulf %204, %201 : vector<8x128xf32>
    %206 = arith.mulf %205, %201 : vector<8x128xf32>
    %207 = arith.mulf %206, %201 : vector<8x128xf32>
    %208 = arith.addf %201, %207 : vector<8x128xf32>
    %cst_76 = arith.constant 0.797884583 : f32
    %209 = vector.broadcast %cst_76 : f32 to vector<8x128xf32>
    %210 = arith.mulf %209, %208 : vector<8x128xf32>
    %211 = math.tanh %210 : vector<8x128xf32>
    %cst_77 = arith.constant 1.000000e+00 : f32
    %212 = vector.broadcast %cst_77 : f32 to vector<8x128xf32>
    %213 = arith.addf %212, %211 : vector<8x128xf32>
    %214 = arith.mulf %203, %213 : vector<8x128xf32>
    %215 = arith.truncf %214 : vector<8x128xf32> to vector<8x128xbf16>
    %c0_78 = arith.constant 0 : index
    %c0_79 = arith.constant 0 : index
    %c0_80 = arith.constant 0 : index
    %216 = vector.load %arg14[%c0_78, %c0_79, %c0_80] : memref<1x128x32xbf16, #tpu.memory_space<vmem>>, vector<1x128x32xbf16>
    %217 = vector.shape_cast %216 : vector<1x128x32xbf16> to vector<128x32xbf16>
    %cst_81 = arith.constant dense<0.000000e+00> : vector<8x32xf32>
    %218 = tpu.matmul %215, %217, %cst_81 {dimension_numbers = #tpu.dot_dimension_numbers<[1], [0], [0], [1], [0, 0, 1, 1], [], []>} : vector<8x128xbf16>, vector<128x32xbf16>, vector<8x32xf32> -> vector<8x32xf32>
    %c0_82 = arith.constant 0 : index
    %c0_83 = arith.constant 0 : index
    %c0_84 = arith.constant 0 : index
    %219 = vector.load %arg15[%c0_82, %c0_83, %c0_84] : memref<1x1x32xf32, #tpu.memory_space<vmem>>, vector<1x1x32xf32>
    %220 = vector.shape_cast %219 : vector<1x1x32xf32> to vector<1x32xf32>
    %221 = vector.broadcast %220 : vector<1x32xf32> to vector<8x32xf32>
    %222 = arith.addf %218, %221 : vector<8x32xf32>
    %223 = arith.addf %167, %222 : vector<8x32xf32>
    %c0_85 = arith.constant 0 : index
    %c0_86 = arith.constant 0 : index
    %224 = vector.load %arg19[%c0_85, %c0_86] : memref<8x32xf32, #tpu.memory_space<vmem>>, vector<8x32xf32>
    tpu.vector_store %arg19[%c0_85, %c0_86], %223 {strides = array<i32>} : memref<8x32xf32, #tpu.memory_space<vmem>>, vector<8x32xf32>,
    %c1_i32 = arith.constant 1 : i32
    %225 = arith.cmpi eq, %arg1, %c1_i32 : i32
    %226 = arith.extui %225 : i1 to i32
    %c0_i32_87 = arith.constant 0 : i32
    %227 = arith.cmpi ne, %226, %c0_i32_87 : i32
    scf.if %227 {
      %c0_88 = arith.constant 0 : index
      %c0_89 = arith.constant 0 : index
      %228 = vector.load %arg16[%c0_88, %c0_89] : memref<1x32xf32, #tpu.memory_space<vmem>>, vector<1x32xf32>
      %c0_90 = arith.constant 0 : index
      %c0_91 = arith.constant 0 : index
      %229 = vector.load %arg17[%c0_90, %c0_91] : memref<1x32xf32, #tpu.memory_space<vmem>>, vector<1x32xf32>
      %cst_92 = arith.constant dense<0.000000e+00> : vector<8xf32>
      %230 = vector.multi_reduction <add>, %223, %cst_92 [1] : vector<8x32xf32> to vector<8xf32>
      %231 = vector.shape_cast %230 : vector<8xf32> to vector<8x1xf32>
      %cst_93 = arith.constant 3.200000e+01 : f32
      %232 = vector.broadcast %cst_93 : f32 to vector<8x1xf32>
      %233 = arith.divf %231, %232 : vector<8x1xf32>
      %234 = vector.broadcast %233 : vector<8x1xf32> to vector<8x32xf32>
      %235 = arith.subf %223, %234 : vector<8x32xf32>
      %236 = arith.mulf %235, %235 : vector<8x32xf32>
      %cst_94 = arith.constant dense<0.000000e+00> : vector<8xf32>
      %237 = vector.multi_reduction <add>, %236, %cst_94 [1] : vector<8x32xf32> to vector<8xf32>
      %238 = vector.shape_cast %237 : vector<8xf32> to vector<8x1xf32>
      %cst_95 = arith.constant 3.200000e+01 : f32
      %239 = vector.broadcast %cst_95 : f32 to vector<8x1xf32>
      %240 = arith.divf %238, %239 : vector<8x1xf32>
      %241 = vector.broadcast %233 : vector<8x1xf32> to vector<8x32xf32>
      %242 = arith.subf %223, %241 : vector<8x32xf32>
      %cst_96 = arith.constant 9.99999974E-6 : f32
      %243 = vector.broadcast %cst_96 : f32 to vector<8x1xf32>
      %244 = arith.addf %240, %243 : vector<8x1xf32>
      %245 = math.rsqrt %244 : vector<8x1xf32>
      %246 = vector.broadcast %245 : vector<8x1xf32> to vector<8x32xf32>
      %247 = arith.mulf %242, %246 : vector<8x32xf32>
      %248 = vector.broadcast %228 : vector<1x32xf32> to vector<8x32xf32>
      %249 = arith.mulf %247, %248 : vector<8x32xf32>
      %250 = vector.broadcast %229 : vector<1x32xf32> to vector<8x32xf32>
      %251 = arith.addf %249, %250 : vector<8x32xf32>
      %c0_97 = arith.constant 0 : index
      %c0_98 = arith.constant 0 : index
      %c0_99 = arith.constant 0 : index
      %252 = vector.load %arg18[%c0_97, %c0_98, %c0_99] : memref<1x8x32xf32, #tpu.memory_space<vmem>>, vector<1x8x32xf32>
      %253 = vector.shape_cast %252 : vector<1x8x32xf32> to vector<8x32xf32>
      %254 = vector.shape_cast %251 : vector<8x32xf32> to vector<1x8x32xf32>
      tpu.vector_store %arg18[%c0_97, %c0_98, %c0_99], %254 {strides = array<i32>} : memref<1x8x32xf32, #tpu.memory_space<vmem>>, vector<1x8x32xf32>,
    } else {
    }
    return
  }
  func.func @transform_0(%arg0: i32, %arg1: i32) -> (i32, i32, i32) {
    %c0_i32 = arith.constant 0 : i32
    %c0_i32_0 = arith.constant 0 : i32
    %c0_i32_1 = arith.constant 0 : i32
    return %arg0, %c0_i32, %c0_i32_0 : i32, i32, i32
  }
  func.func @transform_1(%arg0: i32, %arg1: i32) -> (i32, i32) {
    %c0_i32 = arith.constant 0 : i32
    %c0_i32_0 = arith.constant 0 : i32
    %c0_i32_1 = arith.constant 0 : i32
    return %c0_i32, %c0_i32_0 : i32, i32
  }
  func.func @transform_2(%arg0: i32, %arg1: i32) -> (i32, i32, i32) {
    %c0_i32 = arith.constant 0 : i32
    %c0_i32_0 = arith.constant 0 : i32
    %c0_i32_1 = arith.constant 0 : i32
    return %arg1, %c0_i32, %c0_i32_0 : i32, i32, i32
  }
  func.func @transform_3(%arg0: i32, %arg1: i32) -> (i32, i32, i32) {
    %c0_i32 = arith.constant 0 : i32
    %c0_i32_0 = arith.constant 0 : i32
    %c0_i32_1 = arith.constant 0 : i32
    return %arg1, %c0_i32, %c0_i32_0 : i32, i32, i32
  }
  func.func @transform_4(%arg0: i32, %arg1: i32) -> (i32, i32, i32) {
    %c0_i32 = arith.constant 0 : i32
    %c0_i32_0 = arith.constant 0 : i32
    %c0_i32_1 = arith.constant 0 : i32
    return %arg1, %c0_i32, %c0_i32_0 : i32, i32, i32
  }
  func.func @transform_5(%arg0: i32, %arg1: i32) -> (i32, i32, i32) {
    %c0_i32 = arith.constant 0 : i32
    %c0_i32_0 = arith.constant 0 : i32
    %c0_i32_1 = arith.constant 0 : i32
    return %arg1, %c0_i32, %c0_i32_0 : i32, i32, i32
  }
  func.func @transform_6(%arg0: i32, %arg1: i32) -> (i32, i32, i32, i32) {
    %c0_i32 = arith.constant 0 : i32
    %c0_i32_0 = arith.constant 0 : i32
    %c0_i32_1 = arith.constant 0 : i32
    %c0_i32_2 = arith.constant 0 : i32
    return %arg1, %c0_i32, %c0_i32_0, %c0_i32_1 : i32, i32, i32, i32
  }
  func.func @transform_7(%arg0: i32, %arg1: i32) -> (i32, i32, i32) {
    %c0_i32 = arith.constant 0 : i32
    %c0_i32_0 = arith.constant 0 : i32
    %c0_i32_1 = arith.constant 0 : i32
    return %arg1, %c0_i32, %c0_i32_0 : i32, i32, i32
  }
  func.func @transform_8(%arg0: i32, %arg1: i32) -> (i32, i32, i32) {
    %c0_i32 = arith.constant 0 : i32
    %c0_i32_0 = arith.constant 0 : i32
    %c0_i32_1 = arith.constant 0 : i32
    return %arg1, %c0_i32, %c0_i32_0 : i32, i32, i32
  }
  func.func @transform_9(%arg0: i32, %arg1: i32) -> (i32, i32, i32) {
    %c0_i32 = arith.constant 0 : i32
    %c0_i32_0 = arith.constant 0 : i32
    %c0_i32_1 = arith.constant 0 : i32
    return %arg1, %c0_i32, %c0_i32_0 : i32, i32, i32
  }
  func.func @transform_10(%arg0: i32, %arg1: i32) -> (i32, i32, i32) {
    %c0_i32 = arith.constant 0 : i32
    %c0_i32_0 = arith.constant 0 : i32
    %c0_i32_1 = arith.constant 0 : i32
    return %arg1, %c0_i32, %c0_i32_0 : i32, i32, i32
  }
  func.func @transform_11(%arg0: i32, %arg1: i32) -> (i32, i32, i32) {
    %c0_i32 = arith.constant 0 : i32
    %c0_i32_0 = arith.constant 0 : i32
    %c0_i32_1 = arith.constant 0 : i32
    return %arg1, %c0_i32, %c0_i32_0 : i32, i32, i32
  }
  func.func @transform_12(%arg0: i32, %arg1: i32) -> (i32, i32, i32) {
    %c0_i32 = arith.constant 0 : i32
    %c0_i32_0 = arith.constant 0 : i32
    %c0_i32_1 = arith.constant 0 : i32
    return %arg1, %c0_i32, %c0_i32_0 : i32, i32, i32
  }
  func.func @transform_13(%arg0: i32, %arg1: i32) -> (i32, i32, i32) {
    %c0_i32 = arith.constant 0 : i32
    %c0_i32_0 = arith.constant 0 : i32
    %c0_i32_1 = arith.constant 0 : i32
    return %arg1, %c0_i32, %c0_i32_0 : i32, i32, i32
  }
  func.func @transform_14(%arg0: i32, %arg1: i32) -> (i32, i32) {
    %c0_i32 = arith.constant 0 : i32
    %c0_i32_0 = arith.constant 0 : i32
    %c0_i32_1 = arith.constant 0 : i32
    return %c0_i32, %c0_i32_0 : i32, i32
  }
  func.func @transform_15(%arg0: i32, %arg1: i32) -> (i32, i32) {
    %c0_i32 = arith.constant 0 : i32
    %c0_i32_0 = arith.constant 0 : i32
    %c0_i32_1 = arith.constant 0 : i32
    return %c0_i32, %c0_i32_0 : i32, i32
  }
  func.func @transform_16(%arg0: i32, %arg1: i32) -> (i32, i32, i32) {
    %c0_i32 = arith.constant 0 : i32
    %c0_i32_0 = arith.constant 0 : i32
    %c0_i32_1 = arith.constant 0 : i32
    return %arg0, %c0_i32, %c0_i32_0 : i32, i32, i32
  }
}

</mosaic_0001>

<bundles_post_ra>
// kernel: tpu_custom_call.1
= control target key start
LH: loop header
LB: loop body
LE: loop exit
PB: predicated region body
PF: predicated region fallthrough
CT: control target
= control target key end

     0   :  { %s5201_s0 = inlined_call_operand.hbm [shape: f32[2,8,32], index: 0, kind: input, shape index: {}]   ;;  %s5202_s1 = inlined_call_operand.hbm [shape: f32[8,32], index: 1, kind: input, shape index: {}]   ;;  %s5203_s2 = inlined_call_operand.hbm [shape: f32[2,1,32], index: 2, kind: input, shape index: {}]   ;;  %s5204_s3 = inlined_call_operand.hbm [shape: f32[2,1,32], index: 3, kind: input, shape index: {}]   ;;  %s5205_s4 = inlined_call_operand.hbm [shape: bf16[2,32,96], index: 4, kind: input, shape index: {}]   ;;  %s5206_s5 = inlined_call_operand.hbm [shape: f32[2,1,96], index: 5, kind: input, shape index: {}]   ;;  %s5207_s6 = inlined_call_operand.hbm [shape: bf16[2,4,8,32], index: 6, kind: input, shape index: {}]   ;;  %s5208_s7 = inlined_call_operand.hbm [shape: f32[2,1,32], index: 7, kind: input, shape index: {}]   ;;  %s5209_s8 = inlined_call_operand.hbm [shape: f32[2,1,32], index: 8, kind: input, shape index: {}]   ;;  %s5210_s9 = inlined_call_operand.hbm [shape: f32[2,1,32], index: 9, kind: input, shape index: {}]   ;;  %s5211_s10 = inlined_call_operand.hbm [shape: bf16[2,32,128], index: 10, kind: input, shape index: {}]   ;;  %s5212_s11 = inlined_call_operand.hbm [shape: f32[2,1,128], index: 11, kind: input, shape index: {}]   ;;  %s5213_s12 = inlined_call_operand.hbm [shape: bf16[2,128,32], index: 12, kind: input, shape index: {}]   ;;  %s5214_s13 = inlined_call_operand.hbm [shape: f32[2,1,32], index: 13, kind: input, shape index: {}]   ;;  %s5215_s14 = inlined_call_operand.hbm [shape: f32[1,32], index: 14, kind: input, shape index: {}]   ;;  %s5216_s15 = inlined_call_operand.hbm [shape: f32[1,32], index: 15, kind: input, shape index: {}]   ;;  %s5217_s16 = inlined_call_operand.hbm [shape: f32[2,8,32], index: 16, kind: output, shape index: {}]  }
   0x1   :  { %5258 = sst [smem:[#allocation44_spill]] %s5201_s0 }
   0x2   :  { %5259 = sst [smem:[#allocation45_spill]] %s5202_s1 }
   0x3   :  { %5260 = sst [smem:[#allocation46_spill]] %s5203_s2 }
   0x4   :  { %5261 = sst [smem:[#allocation47_spill]] %s5204_s3 }
   0x5   :  { %5262 = sst [smem:[#allocation48_spill]] %s5205_s4 }
   0x6   :  { %5263 = sst [smem:[#allocation49_spill]] %s5206_s5 }
   0x7   :  { %5264 = sst [smem:[#allocation50_spill]] %s5207_s6 }
   0x8   :  { %5265 = sst [smem:[#allocation51_spill]] %s5208_s7 }
   0x9   :  { %5266 = sst [smem:[#allocation52_spill]] %s5209_s8 }
   0xa   :  { %5267 = sst [smem:[#allocation53_spill]] %s5210_s9 }
   0xb   :  { %5268 = sst [smem:[#allocation54_spill]] %s5211_s10 }
   0xc   :  { %5269 = sst [smem:[#allocation55_spill]] %s5212_s11 }
   0xd   :  { %5270 = sst [smem:[#allocation56_spill]] %s5213_s12 }
   0xe   :  { %5271 = sst [smem:[#allocation57_spill]] %s5214_s13 }
   0xf   :  { %5272 = sst [smem:[#allocation58_spill]] %s5215_s14 }
  0x10   :  { %5273 = sst [smem:[#allocation59_spill]] %s5216_s15 }
  0x11   :  { %5274 = sst [smem:[#allocation60_spill]] %s5217_s16 }
  0x12   :  { %21 = vsyncpa [#allocation4], 0 }
  0x13   :  { %23 = vsyncpa [#allocation4 + $0x1], 0 }
  0x14   :  { %24 = vsyncpa [#allocation7], 0 }
  0x15   :  { %25 = vsyncpa [#allocation22], 0 }
  0x16   :  { %26 = vsyncpa [#allocation5], 0 }
  0x17   :  { %28 = vsyncpa [#allocation5 + $0x1], 0  ;;  %s4122_s21 = smov 0   ;;  %s4124_s22 = smov 0  }
  0x18   :  { %s4126_s23 = smov 0   ;;  %s4128_s24 = smov 0  }
  0x19   :  { %s4130_s25 = smov 0   ;;  %s4132_s26 = smov 0  }
  0x1a   :  { %s4134_s27 = smov 0   ;;  %s4136_s28 = smov 0  }
  0x1b   :  { %s4138_s29 = smov 0   ;;  %s4140_s30 = smov 0  }
  0x1c   :  { %s4142_s0 = smov 0  }
  0x1d LB: > { %5275 = sst [smem:[#allocation30_spill]] %s3968_s21  ;;  %s4178_s17 = sadd.s32 4294967295, %s4008_s0   ;;  %s4008_s0 = sphi %s4142_s0, %s34_s0   ;;  %s4004_s30 = sphi %s4140_s30, %s5363_s30   ;;  %s4000_s29 = sphi %s4138_s29, %s5362_s29   ;;  %s3996_s28 = sphi %s4136_s28, %s5361_s28   ;;  %s3992_s27 = sphi %s4134_s27, %s5360_s27   ;;  %s3988_s26 = sphi %s4132_s26, %s5359_s26   ;;  %s3984_s25 = sphi %s4130_s25, %s5365_s25   ;;  %s3980_s24 = sphi %s4128_s24, %s5364_s24   ;;  %s3976_s23 = sphi %s4126_s23, %s5357_s23   ;;  %s3972_s22 = sphi %s4124_s22, %s5356_s22   ;;  %s3968_s21 = sphi %s4122_s21, %s5355_s21  }
  0x1e   : > { %5276 = sst [smem:[#allocation31_spill]] %s3972_s22  ;;  %s2827_s18 = sadd.s32 4294967294, %s4008_s0  }
  0x1f   : > { %5277 = sst [smem:[#allocation32_spill]] %s3976_s23  ;;  %s43_s19 = sadd.s32 1, %s4000_s29 }
  0x20   : > { %5278 = sst [smem:[#allocation33_spill]] %s3988_s26  ;;  %s46_s20 = sadd.s32 1, %s4004_s30 }
  0x21   : > { %5279 = sst [smem:[#allocation34_spill]] %s3992_s27  ;;  %p44_p0 = scmp.ge.s32.totalorder %s43_s19, 2 }
  0x22   : > { %5280 = sst [smem:[#allocation35_spill]] %s3996_s28  ;;  %s53_s16 = sadd.s32 1, %s3988_s26 }
  0x23   : > { %5281 = sst [smem:[#allocation36_spill]] %s4000_s29  ;;  %p60_p1 = scmp.ne.s32.totalorder %s3988_s26, %s3984_s25 }
  0x24   : > { %5282 = sst [smem:[#allocation37_spill]] %s4004_s30  ;;  %p61_p2 = scmp.eq.s32.totalorder %s4008_s0, 0 }
  0x25   : > { %s5367_s19 = smov (%p44_p0, %s43_s19), 0  ;;  %s5369_s20 = smov (!%p44_p0, %s46_s20), %s4004_s30 }
  0x26   : > { %5283 = sst [smem:[#allocation38_spill]] %s5367_s19  ;;  %p4195_p3 = por %p61_p2, %p60_p1 }
  0x27   : > { %p5233_p4 = scmp.ne.s32.totalorder %s3984_s25, %s3980_s24  ;;  %p48_p5 = scmp.ge.s32.totalorder %s5369_s20, 2 }
  0x28   : > { %s97_s27 = ssub.s32 %s4000_s29, %s5367_s19  ;;  %s100_s13 = sadd.s32 1, %s3976_s23 }
  0x29   : > { %p98_p6 = scmp.eq.s32.totalorder %s97_s27, 0  ;;  %s5371_s20 = smov (%p48_p5, %s5369_s20), 0 }
  0x2a   : > { %5285 = sst [smem:[#allocation39_spill]] %s5371_s20  ;;  %s50_s14 = ssub.s32 %s4004_s30, %s5371_s20 }
  0x2b   : > { %s4207_s15 = scalar_select %p98_p6, %s3976_s23, %s100_s13  }
  0x2c   : > { %p107_p7 = scmp.ne.s32.totalorder %s3976_s23, %s3972_s22  ;;  %p51_p8 = scmp.eq.s32.totalorder %s50_s14, 0 }
  0x2d   : > { %5286 = sst [smem:[#allocation40_spill]] %s4207_s15  ;;  %p465_p11 = scmp.eq.s32.totalorder %s4178_s17, 3 }
  0x2e   : > { %p4217_p10 = por %p107_p7, %p61_p2  ;;  %p471_p13 = scmp.eq.s32.totalorder %s2827_s18, 3 }
  0x2f   : > { %s4223_s27 = scalar_select %p51_p8, %s3988_s26, %s53_s16  }
  0x30   : > { %p4228_p12 = por %p465_p11, %p60_p1  ;;  %p4235_p0 = por %p471_p13, %p5233_p4 }
  0x31   : > { %5288 = sst [smem:[#allocation41_spill]] %s4223_s27  ;;  %p3230_p2 = scmp.lt.s32.totalorder %s4008_s0, 4 }
  0x32   : > { %s5289_s19 = scalar_select %p4228_p12, 1, 0 }
  0x33   : > { %s5291_s13 = scalar_select %p4235_p0, 1, 0 }
  0x34   : > { %5290 = sst [smem:[#allocation42_spill]] %s5289_s19  ;;  %s524_s14 = sand.u32 1, %s4008_s0  }
  0x35   : > { %5292 = sst [smem:[#allocation43_spill]] %s5291_s13  ;;  %s526_s20 = sand.u32 1, %s3988_s26  }
  0x36   : > { %s2833_s15 = sshll.u32 %s526_s20, 3  ;;  %s2834_s12 = sshll.u32 %s4004_s30, 7 }
  0x37   : > { %s5293_s16 = sld [smem:[#allocation44_spill]]  ;;  %s528_s19 = scalar_lea.vmem [#allocation3], %s2833_s15 }
  0x38   : > { %s535_s18 = sshll.u32 %s528_s19, 4  ;;  %p4252_p1 = pnand %p3230_p2, %p4195_p3  ;;  %s4248_s18 = int_to_ptr.vmem [resolvable:$true] %s535_s18 }
  0x39   : > { %s4257_s20 = sand.u32 1, %s3976_s23   ;;  %p4261_p5 = pnand %p3230_p2, %p4217_p10 }
  0x3a   : > { %s4265_s21 = scalar_lea.sflag [#allocation4], %s524_s14  ;;  %p3398_p7 = pneg %p4252_p1 }
  0x3d   : > { %s4246_s27 = scalar_lea.hbm %s5293_s16, %s2834_s12  ;;  %s3401_s19 = scalar_lea.hbm %s5293_s16, 256 }
  0x3e   : > { %s5295_s12 = scalar_select %p4261_p5, 1, 0 }
  0x3f   : > { %s3396_s15 = scalar_lea.hbm %s4246_s27, 128  ;;  %p3402_p10 = scmp.lt.u32.totalorder %s4246_s27, %s5293_s16 }
  0x40   : > { %p3397_p6 = scmp.ne.s32.totalorder %s4246_s27, %s3396_s15  ;;  %p3403_p11 = scmp.lt.u32.totalorder %s3401_s19, %s3396_s15 }
  0x41   : > { %p3405_p2 = scmp.lt.u32.totalorder %s3396_s15, %s4246_s27 }
  0x42   : > { %p3399_p3 = pnand %p3398_p7, %p3397_p6  ;;  %p3404_p13 = por %p3403_p11, %p3402_p10 }
  0x44   : > { %p3400_p8 = pneg %p3399_p3  ;;  %p3406_p9 = por %p3405_p2, %p3404_p13 }
  0x46   : > { %p3407_p4 = pnand %p3406_p9, %p3400_p8 }
  0x48   : > { %3410 = shalt.err (!%p3407_p4)
}
  0x49   : > { %s3411_s14 = scalar_lea.vmem %s4248_s18, 128  ;;  %s4010_s22 = smov [#allocation3]  }
  0x4a   : > { %p3412_p6 = scmp.ne.s32.totalorder %s4248_s18, %s3411_s14  ;;  %s3416_s28 = sshll.u32 %s4010_s22, 4  ;;  %s3417_s28 = int_to_ptr.vmem [resolvable:$false] %s3416_s28 }
  0x4b   : > { %s3418_s30 = scalar_lea.vmem %s3417_s28, 256  ;;  %p3419_p12 = scmp.lt.s32.totalorder %s4248_s18, %s3417_s28 }
  0x4c   : > { %p3414_p3 = pnand %p3412_p6, %p3398_p7  ;;  %p3420_p10 = scmp.lt.s32.totalorder %s3418_s30, %s3411_s14 }
  0x4e   : > { %p3415_p0 = pneg %p3414_p3  ;;  %p3421_p11 = por %p3420_p10, %p3419_p12 }
  0x50   : > { %p3422_p13 = pnand %p3421_p11, %p3415_p0 }
  0x52   : > { %3425 = shalt.err (!%p3422_p13)
}
  0x53   : > { %3186 = dma.hbm_to_vmem [thread:$0]  (!%p4252_p1), %s4246_s27, 128, %s4248_s18, %s4265_s21  }
  0x54   : > { %s4294_s15 = sshll.u32 %s4000_s29, 4  ;;  %s5296_s2 = sld [smem:[#allocation46_spill]] }
  0x55   : > { %s545_s13 = scalar_lea.vmem [#allocation8], %s4257_s20  ;;  %p4307_p9 = pneg %p4261_p5 }
  0x56   : > { %s552_s14 = sshll.u32 %s545_s13, 4  ;;  %s553_s14 = int_to_ptr.vmem [resolvable:$true] %s552_s14 }
  0x57   : > { %s5297_s27 = scalar_select %p4307_p9, 1, 0 }
  0x5a   : > { %s4300_s22 = scalar_lea.hbm %s5296_s2, %s4294_s15  ;;  %s3431_s19 = scalar_lea.hbm %s5296_s2, 32 }
  0x5b   : > { %s3426_s28 = scalar_lea.hbm %s4300_s22, 16  ;;  %p3432_p1 = scmp.lt.u32.totalorder %s4300_s22, %s5296_s2 }
  0x5c   : > { %p3427_p4 = scmp.ne.s32.totalorder %s4300_s22, %s3426_s28  ;;  %p3433_p7 = scmp.lt.u32.totalorder %s3431_s19, %s3426_s28 }
  0x5d   : > { %p3435_p2 = scmp.lt.u32.totalorder %s3426_s28, %s4300_s22 }
  0x5e   : > { %p3429_p12 = pnand %p4307_p9, %p3427_p4  ;;  %p3434_p8 = por %p3433_p7, %p3432_p1 }
  0x60   : > { %p3430_p0 = pneg %p3429_p12  ;;  %p3436_p6 = por %p3435_p2, %p3434_p8 }
  0x62   : > { %p3437_p3 = pnand %p3436_p6, %p3430_p0 }
  0x64   : > { %3440 = shalt.err (!%p3437_p3)
}
  0x65   : > { %s3441_s13 = scalar_lea.vmem %s553_s14, 16  ;;  %s4011_s26 = smov [#allocation8]  }
  0x66   : > { %p3442_p10 = scmp.ne.s32.totalorder %s553_s14, %s3441_s13  ;;  %s3446_s23 = sshll.u32 %s4011_s26, 4  ;;  %s3447_s23 = int_to_ptr.vmem [resolvable:$false] %s3446_s23 }
  0x67   : > { %s3448_s18 = scalar_lea.vmem %s3447_s23, 32  ;;  %p3449_p4 = scmp.lt.s32.totalorder %s553_s14, %s3447_s23 }
  0x68   : > { %p3444_p11 = pnand %p3442_p10, %p4307_p9  ;;  %p3450_p12 = scmp.lt.s32.totalorder %s3448_s18, %s3441_s13 }
  0x6a   : > { %p3445_p13 = pneg %p3444_p11  ;;  %p3451_p5 = por %p3450_p12, %p3449_p4 }
  0x6c   : > { %p3452_p1 = pnand %p3451_p5, %p3445_p13 }
  0x6e   : > { %3455 = shalt.err (!%p3452_p1)
}
  0x6f   : > { %p5298_p7 = scmp.ne.s32.totalorder %s5295_s12, 0  ;;  %s5299_s3 = sld [smem:[#allocation47_spill]] }
  0x70   : > { %s562_s23 = scalar_lea.vmem [#allocation9], %s4257_s20  ;;  %s4335_s19 = sshll.u32 %s4257_s20, 4 }
  0x71   : > { %3189 = dma.hbm_to_vmem [thread:$0]  (!%p5298_p7), %s4300_s22, 16, %s553_s14, %s4265_s21  }
  0x72   : > { %s569_s30 = sshll.u32 %s562_s23, 4  ;;  %s570_s30 = int_to_ptr.vmem [resolvable:$true] %s569_s30 }
  0x75   : > { %s4331_s26 = scalar_lea.hbm %s5299_s3, %s4294_s15  ;;  %s3461_s13 = scalar_lea.hbm %s5299_s3, 32 }
  0x76   : > { %s3456_s1 = scalar_lea.hbm %s4331_s26, 16  ;;  %p3462_p2 = scmp.lt.u32.totalorder %s4331_s26, %s5299_s3 }
  0x77   : > { %p3457_p5 = scmp.ne.s32.totalorder %s4331_s26, %s3456_s1  ;;  %p3463_p6 = scmp.lt.u32.totalorder %s3461_s13, %s3456_s1 }
  0x78   : > { %p3465_p10 = scmp.lt.u32.totalorder %s3456_s1, %s4331_s26 }
  0x79   : > { %p3459_p0 = pnand %p3457_p5, %p4307_p9  ;;  %p3464_p3 = por %p3463_p6, %p3462_p2 }
  0x7b   : > { %p3460_p8 = pneg %p3459_p0  ;;  %p3466_p11 = por %p3465_p10, %p3464_p3 }
  0x7d   : > { %p3467_p13 = pnand %p3466_p11, %p3460_p8 }
  0x7f   : > { %3470 = shalt.err (!%p3467_p13)
}
  0x80   : > { %s3471_s28 = scalar_lea.vmem %s570_s30, 16  ;;  %s4012_s23 = smov [#allocation9]  }
  0x81   : > { %p3472_p4 = scmp.ne.s32.totalorder %s570_s30, %s3471_s28  ;;  %s3476_s2 = sshll.u32 %s4012_s23, 4  ;;  %s3477_s2 = int_to_ptr.vmem [resolvable:$false] %s3476_s2 }
  0x82   : > { %s3478_s22 = scalar_lea.vmem %s3477_s2, 32  ;;  %p3479_p5 = scmp.lt.s32.totalorder %s570_s30, %s3477_s2 }
  0x83   : > { %p3474_p12 = pnand %p3472_p4, %p4307_p9  ;;  %p3480_p0 = scmp.lt.s32.totalorder %s3478_s22, %s3471_s28 }
  0x85   : > { %p3475_p1 = pneg %p3474_p12  ;;  %p3481_p7 = por %p3480_p0, %p3479_p5 }
  0x87   : > { %p3482_p2 = pnand %p3481_p7, %p3475_p1 }
  0x89   : > { %3485 = shalt.err (!%p3482_p2)
}
  0x8a   : > { %p5300_p6 = scmp.ne.s32.totalorder %s5295_s12, 0  ;;  %s4356_s1 = sshll.u32 %s4000_s29, 8 }
  0x8b   : > { %s5301_s4 = sld [smem:[#allocation48_spill]]  ;;  %s580_s2 = scalar_lea.vmem [#allocation10], %s4335_s19 }
  0x8c   : > { %3192 = dma.hbm_to_vmem [thread:$0]  (!%p5300_p6), %s4331_s26, 16, %s570_s30, %s4265_s21  }
  0x8d   : > { %s587_s16 = sshll.u32 %s580_s2, 4  ;;  %s4365_s16 = int_to_ptr.vmem [resolvable:$true] %s587_s16 }
  0x91   : > { %s4362_s18 = scalar_lea.hbm %s5301_s4, %s4356_s1  ;;  %s3491_s23 = scalar_lea.hbm %s5301_s4, 512 }
  0x92   : > { %s3486_s28 = scalar_lea.hbm %s4362_s18, 256  ;;  %p3492_p10 = scmp.lt.u32.totalorder %s4362_s18, %s5301_s4 }
  0x93   : > { %p3487_p7 = scmp.ne.s32.totalorder %s4362_s18, %s3486_s28  ;;  %p3493_p11 = scmp.lt.u32.totalorder %s3491_s23, %s3486_s28 }
  0x94   : > { %p3495_p4 = scmp.lt.u32.totalorder %s3486_s28, %s4362_s18 }
  0x95   : > { %p3489_p8 = pnand %p3487_p7, %p4307_p9  ;;  %p3494_p13 = por %p3493_p11, %p3492_p10 }
  0x97   : > { %p3490_p3 = pneg %p3489_p8  ;;  %p3496_p12 = por %p3495_p4, %p3494_p13 }
  0x99   : > { %p3497_p1 = pnand %p3496_p12, %p3490_p3 }
  0x9b   : > { %3500 = shalt.err (!%p3497_p1)
}
  0x9c   : > { %s3501_s13 = scalar_lea.vmem %s4365_s16, 256  ;;  %s4013_s2 = smov [#allocation10]  }
  0x9d   : > { %p3502_p5 = scmp.ne.s32.totalorder %s4365_s16, %s3501_s13  ;;  %s3506_s26 = sshll.u32 %s4013_s2, 4  ;;  %s3507_s26 = int_to_ptr.vmem [resolvable:$false] %s3506_s26 }
  0x9e   : > { %s3508_s30 = scalar_lea.vmem %s3507_s26, 512  ;;  %p3509_p7 = scmp.lt.s32.totalorder %s4365_s16, %s3507_s26 }
  0x9f   : > { %p3504_p0 = pnand %p3502_p5, %p4307_p9  ;;  %p3510_p8 = scmp.lt.s32.totalorder %s3508_s30, %s3501_s13 }
  0xa1   : > { %p3505_p2 = pneg %p3504_p0  ;;  %p3511_p10 = por %p3510_p8, %p3509_p7 }
  0xa3   : > { %p3512_p11 = pnand %p3511_p10, %p3505_p2 }
  0xa5   : > { %3515 = shalt.err (!%p3512_p11)
}
  0xa6   : > { %s5240_s28 = smov 64   ;;  %s5243_s23 = smov 4  }
  0xa7   : > { %3195 = dma.hbm_to_vmem [thread:$0]  (!%p5300_p6), %s4362_s18, 256, %s4365_s16, %s4265_s21, %s5240_s28, %s5240_s28, %s5243_s23  }
  0xa8   : > { %s5302_s5 = sld [smem:[#allocation49_spill]]  ;;  %s600_s2 = scalar_lea.vmem [#allocation11], %s4257_s20 }
  0xa9   : > { %s607_s26 = sshll.u32 %s600_s2, 4  ;;  %s608_s26 = int_to_ptr.vmem [resolvable:$true] %s607_s26 }
  0xae   : > { %s4396_s13 = scalar_lea.hbm %s5302_s5, %s4294_s15  ;;  %s3521_s18 = scalar_lea.hbm %s5302_s5, 32 }
  0xaf   : > { %s3516_s30 = scalar_lea.hbm %s4396_s13, 16  ;;  %p3522_p12 = scmp.lt.u32.totalorder %s4396_s13, %s5302_s5 }
  0xb0   : > { %p3517_p3 = scmp.ne.s32.totalorder %s4396_s13, %s3516_s30  ;;  %p3523_p1 = scmp.lt.u32.totalorder %s3521_s18, %s3516_s30 }
  0xb1   : > { %p3525_p0 = scmp.lt.u32.totalorder %s3516_s30, %s4396_s13 }
  0xb2   : > { %p3519_p13 = pnand %p3517_p3, %p4307_p9  ;;  %p3524_p5 = por %p3523_p1, %p3522_p12 }
  0xb4   : > { %p3520_p4 = pneg %p3519_p13  ;;  %p3526_p2 = por %p3525_p0, %p3524_p5 }
  0xb6   : > { %p3527_p7 = pnand %p3526_p2, %p3520_p4 }
  0xb8   : > { %3530 = shalt.err (!%p3527_p7)
}
  0xb9   : > { %s3531_s14 = scalar_lea.vmem %s608_s26, 16  ;;  %s4016_s2 = smov [#allocation11]  }
  0xba   : > { %p3532_p8 = scmp.ne.s32.totalorder %s608_s26, %s3531_s14  ;;  %s3536_s28 = sshll.u32 %s4016_s2, 4  ;;  %s3537_s28 = int_to_ptr.vmem [resolvable:$false] %s3536_s28 }
  0xbb   : > { %s3538_s3 = scalar_lea.vmem %s3537_s28, 32  ;;  %p3539_p3 = scmp.lt.s32.totalorder %s608_s26, %s3537_s28 }
  0xbc   : > { %p3534_p10 = pnand %p3532_p8, %p4307_p9  ;;  %p3540_p13 = scmp.lt.s32.totalorder %s3538_s3, %s3531_s14 }
  0xbe   : > { %p3535_p11 = pneg %p3534_p10  ;;  %p3541_p6 = por %p3540_p13, %p3539_p3 }
  0xc0   : > { %p3542_p1 = pnand %p3541_p6, %p3535_p11 }
  0xc2   : > { %3545 = shalt.err (!%p3542_p1)
}
  0xc3   : > { %p5303_p12 = scmp.ne.s32.totalorder %s5295_s12, 0  ;;  %s5304_s6 = sld [smem:[#allocation50_spill]] }
  0xc4   : > { %s618_s28 = scalar_lea.vmem [#allocation12], %s4335_s19 }
  0xc5   : > { %3198 = dma.hbm_to_vmem [thread:$0]  (!%p5303_p12), %s4396_s13, 16, %s608_s26, %s4265_s21  }
  0xc6   : > { %s625_s16 = sshll.u32 %s618_s28, 4  ;;  %s4424_s16 = int_to_ptr.vmem [resolvable:$true] %s625_s16 }
  0xc9   : > { %s4421_s18 = scalar_lea.hbm %s5304_s6, %s4356_s1  ;;  %s3551_s26 = scalar_lea.hbm %s5304_s6, 512 }
  0xca   : > { %s3546_s22 = scalar_lea.hbm %s4421_s18, 256  ;;  %p3552_p0 = scmp.lt.u32.totalorder %s4421_s18, %s5304_s6 }
  0xcb   : > { %p3547_p6 = scmp.ne.s32.totalorder %s4421_s18, %s3546_s22  ;;  %p3553_p2 = scmp.lt.u32.totalorder %s3551_s26, %s3546_s22 }
  0xcc   : > { %p3555_p8 = scmp.lt.u32.totalorder %s3546_s22, %s4421_s18 }
  0xcd   : > { %p3549_p4 = pnand %p3547_p6, %p4307_p9  ;;  %p3554_p7 = por %p3553_p2, %p3552_p0 }
  0xcf   : > { %p3550_p5 = pneg %p3549_p4  ;;  %p3556_p10 = por %p3555_p8, %p3554_p7 }
  0xd1   : > { %p3557_p11 = pnand %p3556_p10, %p3550_p5 }
  0xd3   : > { %3560 = shalt.err (!%p3557_p11)
}
  0xd4   : > { %s3561_s4 = scalar_lea.vmem %s4424_s16, 256  ;;  %s4017_s30 = smov [#allocation12]  }
  0xd5   : > { %p3562_p3 = scmp.ne.s32.totalorder %s4424_s16, %s3561_s4  ;;  %s3566_s28 = sshll.u32 %s4017_s30, 4  ;;  %s3567_s28 = int_to_ptr.vmem [resolvable:$false] %s3566_s28 }
  0xd6   : > { %s3568_s14 = scalar_lea.vmem %s3567_s28, 512  ;;  %p3569_p6 = scmp.lt.s32.totalorder %s4424_s16, %s3567_s28 }
  0xd7   : > { %p3564_p13 = pnand %p3562_p3, %p4307_p9  ;;  %p3570_p4 = scmp.lt.s32.totalorder %s3568_s14, %s3561_s4 }
  0xd9   : > { %p3565_p1 = pneg %p3564_p13  ;;  %p3571_p0 = por %p3570_p4, %p3569_p6 }
  0xdb   : > { %p3572_p2 = pnand %p3571_p0, %p3565_p1 }
  0xdd   : > { %3575 = shalt.err (!%p3572_p2)
}
  0xde   : > { %s5305_s22 = smov 64   ;;  %s5306_s7 = sld [smem:[#allocation51_spill]] }
  0xdf   : > { %3201 = dma.hbm_to_vmem [thread:$0]  (!%p5303_p12), %s4421_s18, 256, %s4424_s16, %s4265_s21, %s5305_s22, %s5305_s22, %s5243_s23  }
  0xe0   : > { %s638_s3 = scalar_lea.vmem [#allocation13], %s4257_s20 }
  0xe1   : > { %s645_s4 = sshll.u32 %s638_s3, 4  ;;  %s646_s4 = int_to_ptr.vmem [resolvable:$true] %s645_s4 }
  0xe4   : > { %s4455_s2 = scalar_lea.hbm %s5306_s7, %s4294_s15  ;;  %s3581_s18 = scalar_lea.hbm %s5306_s7, 32 }
  0xe5   : > { %s3576_s30 = scalar_lea.hbm %s4455_s2, 16  ;;  %p3582_p10 = scmp.lt.u32.totalorder %s4455_s2, %s5306_s7 }
  0xe6   : > { %p3577_p5 = scmp.ne.s32.totalorder %s4455_s2, %s3576_s30  ;;  %p3583_p11 = scmp.lt.u32.totalorder %s3581_s18, %s3576_s30 }
  0xe7   : > { %p3585_p13 = scmp.lt.u32.totalorder %s3576_s30, %s4455_s2 }
  0xe8   : > { %p3579_p7 = pnand %p3577_p5, %p4307_p9  ;;  %p3584_p3 = por %p3583_p11, %p3582_p10 }
  0xea   : > { %p3580_p8 = pneg %p3579_p7  ;;  %p3586_p1 = por %p3585_p13, %p3584_p3 }
  0xec   : > { %p3587_p6 = pnand %p3586_p1, %p3580_p8 }
  0xee   : > { %3590 = shalt.err (!%p3587_p6)
}
  0xef   : > { %s3591_s26 = scalar_lea.vmem %s646_s4, 16  ;;  %s4018_s3 = smov [#allocation13]  }
  0xf0   : > { %p3592_p4 = scmp.ne.s32.totalorder %s646_s4, %s3591_s26  ;;  %s3596_s23 = sshll.u32 %s4018_s3, 4  ;;  %s3597_s23 = int_to_ptr.vmem [resolvable:$false] %s3596_s23 }
  0xf1   : > { %s3598_s28 = scalar_lea.vmem %s3597_s23, 32  ;;  %p3599_p5 = scmp.lt.s32.totalorder %s646_s4, %s3597_s23 }
  0xf2   : > { %p3594_p0 = pnand %p3592_p4, %p4307_p9  ;;  %p3600_p7 = scmp.lt.s32.totalorder %s3598_s28, %s3591_s26 }
  0xf4   : > { %p3595_p2 = pneg %p3594_p0  ;;  %p3601_p12 = por %p3600_p7, %p3599_p5 }
  0xf6   : > { %p3602_p10 = pnand %p3601_p12, %p3595_p2 }
  0xf8   : > { %3605 = shalt.err (!%p3602_p10)
}
  0xf9   : > { %p5307_p11 = scmp.ne.s32.totalorder %s5295_s12, 0  ;;  %s5308_s8 = sld [smem:[#allocation52_spill]] }
  0xfa   : > { %s655_s23 = scalar_lea.vmem [#allocation14], %s4257_s20 }
  0xfb   : > { %3204 = dma.hbm_to_vmem [thread:$0]  (!%p5307_p11), %s4455_s2, 16, %s646_s4, %s4265_s21  }
  0xfc   : > { %s662_s16 = sshll.u32 %s655_s23, 4  ;;  %s663_s16 = int_to_ptr.vmem [resolvable:$true] %s662_s16 }
  0xff   : > { %s4480_s18 = scalar_lea.hbm %s5308_s8, %s4294_s15  ;;  %s3611_s2 = scalar_lea.hbm %s5308_s8, 32 }
 0x100   : > { %s3606_s13 = scalar_lea.hbm %s4480_s18, 16  ;;  %p3612_p13 = scmp.lt.u32.totalorder %s4480_s18, %s5308_s8 }
 0x101   : > { %p3607_p12 = scmp.ne.s32.totalorder %s4480_s18, %s3606_s13  ;;  %p3613_p1 = scmp.lt.u32.totalorder %s3611_s2, %s3606_s13 }
 0x102   : > { %p3615_p4 = scmp.lt.u32.totalorder %s3606_s13, %s4480_s18 }
 0x103   : > { %p3609_p8 = pnand %p3607_p12, %p4307_p9  ;;  %p3614_p6 = por %p3613_p1, %p3612_p13 }
 0x105   : > { %p3610_p3 = pneg %p3609_p8  ;;  %p3616_p0 = por %p3615_p4, %p3614_p6 }
 0x107   : > { %p3617_p2 = pnand %p3616_p0, %p3610_p3 }
 0x109   : > { %3620 = shalt.err (!%p3617_p2)
}
 0x10a   : > { %s3621_s30 = scalar_lea.vmem %s663_s16, 16  ;;  %s4019_s14 = smov [#allocation14]  }
 0x10b   : > { %p3622_p5 = scmp.ne.s32.totalorder %s663_s16, %s3621_s30  ;;  %s3626_s23 = sshll.u32 %s4019_s14, 4  ;;  %s3627_s23 = int_to_ptr.vmem [resolvable:$false] %s3626_s23 }
 0x10c   : > { %s3628_s26 = scalar_lea.vmem %s3627_s23, 32  ;;  %p3629_p12 = scmp.lt.s32.totalorder %s663_s16, %s3627_s23 }
 0x10d   : > { %p3624_p7 = pnand %p3622_p5, %p4307_p9  ;;  %p3630_p8 = scmp.lt.s32.totalorder %s3628_s26, %s3621_s30 }
 0x10f   : > { %p3625_p10 = pneg %p3624_p7  ;;  %p3631_p11 = por %p3630_p8, %p3629_p12 }
 0x111   : > { %p3632_p1 = pnand %p3631_p11, %p3625_p10 }
 0x113   : > { %3635 = shalt.err (!%p3632_p1)
}
 0x114   : > { %p5309_p13 = scmp.ne.s32.totalorder %s5295_s12, 0  ;;  %s5310_s9 = sld [smem:[#allocation53_spill]] }
 0x115   : > { %s672_s4 = scalar_lea.vmem [#allocation15], %s4257_s20 }
 0x116   : > { %3207 = dma.hbm_to_vmem [thread:$0]  (!%p5309_p13), %s4480_s18, 16, %s663_s16, %s4265_s21  }
 0x117   : > { %s679_s28 = sshll.u32 %s672_s4, 4  ;;  %s680_s28 = int_to_ptr.vmem [resolvable:$true] %s679_s28 }
 0x11a   : > { %s4505_s2 = scalar_lea.hbm %s5310_s9, %s4294_s15  ;;  %s3641_s18 = scalar_lea.hbm %s5310_s9, 32 }
 0x11b   : > { %s3636_s30 = scalar_lea.hbm %s4505_s2, 16  ;;  %p3642_p4 = scmp.lt.u32.totalorder %s4505_s2, %s5310_s9 }
 0x11c   : > { %p3637_p11 = scmp.ne.s32.totalorder %s4505_s2, %s3636_s30  ;;  %p3643_p0 = scmp.lt.u32.totalorder %s3641_s18, %s3636_s30 }
 0x11d   : > { %p3645_p5 = scmp.lt.u32.totalorder %s3636_s30, %s4505_s2 }
 0x11e   : > { %p3639_p3 = pnand %p3637_p11, %p4307_p9  ;;  %p3644_p2 = por %p3643_p0, %p3642_p4 }
 0x120   : > { %p3640_p6 = pneg %p3639_p3  ;;  %p3646_p7 = por %p3645_p5, %p3644_p2 }
 0x122   : > { %p3647_p10 = pnand %p3646_p7, %p3640_p6 }
 0x124   : > { %3650 = shalt.err (!%p3647_p10)
}
 0x125   : > { %s3651_s13 = scalar_lea.vmem %s680_s28, 16  ;;  %s4020_s3 = smov [#allocation15]  }
 0x126   : > { %p3652_p12 = scmp.ne.s32.totalorder %s680_s28, %s3651_s13  ;;  %s3656_s4 = sshll.u32 %s4020_s3, 4  ;;  %s3657_s4 = int_to_ptr.vmem [resolvable:$false] %s3656_s4 }
 0x127   : > { %s3658_s14 = scalar_lea.vmem %s3657_s4, 32  ;;  %p3659_p11 = scmp.lt.s32.totalorder %s680_s28, %s3657_s4 }
 0x128   : > { %p3654_p8 = pnand %p3652_p12, %p4307_p9  ;;  %p3660_p3 = scmp.lt.s32.totalorder %s3658_s14, %s3651_s13 }
 0x12a   : > { %p3655_p1 = pneg %p3654_p8  ;;  %p3661_p13 = por %p3660_p3, %p3659_p11 }
 0x12c   : > { %p3662_p0 = pnand %p3661_p13, %p3655_p1 }
 0x12e   : > { %3665 = shalt.err (!%p3662_p0)
}
 0x12f   : > { %p5311_p4 = scmp.ne.s32.totalorder %s5295_s12, 0  ;;  %s5312_s10 = sld [smem:[#allocation54_spill]] }
 0x130   : > { %s690_s16 = scalar_lea.vmem [#allocation16], %s4335_s19 }
 0x131   : > { %3210 = dma.hbm_to_vmem [thread:$0]  (!%p5311_p4), %s4505_s2, 16, %s680_s28, %s4265_s21  }
 0x132   : > { %s697_s26 = sshll.u32 %s690_s16, 4  ;;  %s4533_s26 = int_to_ptr.vmem [resolvable:$true] %s697_s26 }
 0x135   : > { %s4530_s18 = scalar_lea.hbm %s5312_s10, %s4356_s1  ;;  %s3671_s28 = scalar_lea.hbm %s5312_s10, 512 }
 0x136   : > { %s3666_s13 = scalar_lea.hbm %s4530_s18, 256  ;;  %p3672_p5 = scmp.lt.u32.totalorder %s4530_s18, %s5312_s10 }
 0x137   : > { %p3667_p13 = scmp.ne.s32.totalorder %s4530_s18, %s3666_s13  ;;  %p3673_p7 = scmp.lt.u32.totalorder %s3671_s28, %s3666_s13 }
 0x138   : > { %p3675_p12 = scmp.lt.u32.totalorder %s3666_s13, %s4530_s18 }
 0x139   : > { %p3669_p6 = pnand %p3667_p13, %p4307_p9  ;;  %p3674_p10 = por %p3673_p7, %p3672_p5 }
 0x13b   : > { %p3670_p2 = pneg %p3669_p6  ;;  %p3676_p8 = por %p3675_p12, %p3674_p10 }
 0x13d   : > { %p3677_p1 = pnand %p3676_p8, %p3670_p2 }
 0x13f   : > { %3680 = shalt.err (!%p3677_p1)
}
 0x140   : > { %s3681_s19 = scalar_lea.vmem %s4533_s26, 256  ;;  %s4021_s14 = smov [#allocation16]  }
 0x141   : > { %p3682_p11 = scmp.ne.s32.totalorder %s4533_s26, %s3681_s19  ;;  %s3686_s30 = sshll.u32 %s4021_s14, 4  ;;  %s3687_s30 = int_to_ptr.vmem [resolvable:$false] %s3686_s30 }
 0x142   : > { %s3688_s23 = scalar_lea.vmem %s3687_s30, 512  ;;  %p3689_p13 = scmp.lt.s32.totalorder %s4533_s26, %s3687_s30 }
 0x143   : > { %p3684_p3 = pnand %p3682_p11, %p4307_p9  ;;  %p3690_p6 = scmp.lt.s32.totalorder %s3688_s23, %s3681_s19 }
 0x145   : > { %p3685_p0 = pneg %p3684_p3  ;;  %p3691_p5 = por %p3690_p6, %p3689_p13 }
 0x147   : > { %p3692_p7 = pnand %p3691_p5, %p3685_p0 }
 0x149   : > { %3695 = shalt.err (!%p3692_p7)
}
 0x14a   : > { %s5313_s16 = smov 4   ;;  %s5314_s11 = sld [smem:[#allocation55_spill]] }
 0x14b   : > { %3213 = dma.hbm_to_vmem [thread:$0]  (!%p5311_p4), %s4530_s18, 256, %s4533_s26, %s4265_s21, %s5305_s22, %s5305_s22, %s5313_s16  }
 0x14c   : > { %s710_s28 = scalar_lea.vmem [#allocation17], %s4257_s20 }
 0x14d   : > { %s717_s4 = sshll.u32 %s710_s28, 4  ;;  %s718_s4 = int_to_ptr.vmem [resolvable:$true] %s717_s4 }
 0x150   : > { %s4564_s2 = scalar_lea.hbm %s5314_s11, %s4294_s15  ;;  %s3701_s18 = scalar_lea.hbm %s5314_s11, 32 }
 0x151   : > { %s3696_s1 = scalar_lea.hbm %s4564_s2, 16  ;;  %p3702_p8 = scmp.lt.u32.totalorder %s4564_s2, %s5314_s11 }
 0x152   : > { %p3697_p2 = scmp.ne.s32.totalorder %s4564_s2, %s3696_s1  ;;  %p3703_p1 = scmp.lt.u32.totalorder %s3701_s18, %s3696_s1 }
 0x153   : > { %p3705_p3 = scmp.lt.u32.totalorder %s3696_s1, %s4564_s2 }
 0x154   : > { %p3699_p10 = pnand %p3697_p2, %p4307_p9  ;;  %p3704_p11 = por %p3703_p1, %p3702_p8 }
 0x156   : > { %p3700_p12 = pneg %p3699_p10  ;;  %p3706_p0 = por %p3705_p3, %p3704_p11 }
 0x158   : > { %p3707_p13 = pnand %p3706_p0, %p3700_p12 }
 0x15a   : > { %3710 = shalt.err (!%p3707_p13)
}
 0x15b   : > { %s3711_s23 = scalar_lea.vmem %s718_s4, 16  ;;  %s4022_s13 = smov [#allocation17]  }
 0x15c   : > { %p3712_p6 = scmp.ne.s32.totalorder %s718_s4, %s3711_s23  ;;  %s3716_s3 = sshll.u32 %s4022_s13, 4  ;;  %s3717_s3 = int_to_ptr.vmem [resolvable:$false] %s3716_s3 }
 0x15d   : > { %s3718_s28 = scalar_lea.vmem %s3717_s3, 32  ;;  %p3719_p2 = scmp.lt.s32.totalorder %s718_s4, %s3717_s3 }
 0x15e   : > { %p3714_p5 = pnand %p3712_p6, %p4307_p9  ;;  %p3720_p10 = scmp.lt.s32.totalorder %s3718_s28, %s3711_s23 }
 0x160   : > { %p3715_p7 = pneg %p3714_p5  ;;  %p3721_p4 = por %p3720_p10, %p3719_p2 }
 0x162   : > { %p3722_p1 = pnand %p3721_p4, %p3715_p7 }
 0x164   : > { %3725 = shalt.err (!%p3722_p1)
}
 0x165   : > { %p5315_p8 = scmp.ne.s32.totalorder %s5295_s12, 0  ;;  %s5316_s1 = sld [smem:[#allocation31_spill]] }
 0x166   : > { %s5317_s19 = sld [smem:[#allocation30_spill]]  ;;  %p5248_p12 = scmp.eq.s32.totalorder %s4178_s17, 0 }
 0x167   : > { %3216 = dma.hbm_to_vmem [thread:$0]  (!%p5315_p8), %s4564_s2, 16, %s718_s4, %s4265_s21  }
 0x168   : > { %p2828_p4 = scmp.ge.s32.totalorder %s4008_s0, 1  ;;  %p478_p11 = scmp.lt.s32.totalorder %s4008_s0, 5 }
 0x169   : > { %p5318_p3 = scmp.ne.s32.totalorder %s3984_s25, %s3980_s24  ;;  %s4023_s2 = smov [#allocation6]  }
 0x16a   : > { %p4606_p5 = pnand %p2828_p4, %p478_p11  ;;  %s491_s4 = sshll.u32 %s4023_s2, 4  ;;  %s492_s4 = int_to_ptr.vmem [resolvable:$true] %s491_s4 }
 0x16b   : > { %p4593_p0 = por %p5248_p12, %p5318_p3  ;;  %s2851_s30 = sshll.u32 %s4257_s20, 6 }
 0x16c   : > { %p5320_p13 = scmp.ne.s32.totalorder %s5316_s1, %s5317_s19  ;;  %p3173_p7 = pneg %p4606_p5 }
 0x16d   : > { %s5319_s14 = scalar_select %p4593_p0, 1, 0 }
 0x16e   : > { %p4602_p6 = por %p5320_p13, %p5248_p12  ;;  %s2921_s23 = sshll.u32 %s4000_s29, 10 }
 0x16f   : > { %s5322_s26 = scalar_select %p4606_p5, 1, 0 }
 0x170   : > { %s5321_s18 = scalar_select %p4602_p6, 1, 0 }
 0x171   : > { %p4616_p2 = pnand %p3173_p7, %p5248_p12  ;;  %s5324_s1 = sld [smem:[#allocation56_spill]] }
 0x172   : > { %s728_s5 = scalar_lea.vmem [#allocation18], %s2851_s30  ;;  %s5325_s8 = sld [smem:[#allocation45_spill]] }
 0x173   : > { %s5323_s13 = scalar_select %p4616_p2, 1, 0 }
 0x174   : > { %s735_s6 = sshll.u32 %s728_s5, 4  ;;  %p4635_p1 = pneg %p4616_p2  ;;  %s4625_s6 = int_to_ptr.vmem [resolvable:$true] %s735_s6 }
 0x177   : > { %s4623_s19 = scalar_lea.hbm %s5324_s1, %s2921_s23 }
 0x178   : > { %s3726_s9 = scalar_lea.hbm %s5325_s8, 128 }
 0x179   : > { %p3727_p10 = scmp.ne.s32.totalorder %s5325_s8, %s3726_s9  ;;  %p3733_p3 = scmp.lt.u32.totalorder %s3726_s9, %s5325_s8 }
 0x17b   : > { %p3729_p4 = pnand %p4635_p1, %p3727_p10 }
 0x17d   : > { %p3730_p11 = pneg %p3729_p4 }
 0x17f   : > { %p3735_p13 = pnand %p3733_p3, %p3730_p11 }
 0x181   : > { %3738 = shalt.err (!%p3735_p13)
}
 0x182   : > { %s3739_s7 = scalar_lea.vmem %s492_s4, 128  ;;  %p3747_p0 = scmp.lt.s32.totalorder %s492_s4, %s492_s4 }
 0x183   : > { %p3740_p7 = scmp.ne.s32.totalorder %s492_s4, %s3739_s7  ;;  %p3748_p5 = scmp.lt.s32.totalorder %s3739_s7, %s3739_s7 }
 0x185   : > { %p3742_p12 = pnand %p3740_p7, %p4635_p1  ;;  %p3749_p8 = por %p3748_p5, %p3747_p0 }
 0x187   : > { %p3743_p6 = pneg %p3742_p12 }
 0x189   : > { %p3750_p9 = pnand %p3749_p8, %p3743_p6 }
 0x18b   : > { %3753 = shalt.err (!%p3750_p9)
}
 0x18c   : > { %3176 = dma.hbm_to_vmem [thread:$0]  (!%p4616_p2), %s5325_s8, 128, %s492_s4, [#allocation7]  }
 0x18d   : > { %s3754_s9 = scalar_lea.hbm %s4623_s19, 1024  ;;  %p5327_p4 = scmp.ne.s32.totalorder %s5297_s27, 0 }
 0x18e   : > { %p3755_p10 = scmp.ne.s32.totalorder %s4623_s19, %s3754_s9  ;;  %s3759_s28 = scalar_lea.hbm %s5324_s1, 2048 }
 0x18f   : > { %p3760_p9 = scmp.lt.u32.totalorder %s4623_s19, %s5324_s1  ;;  %p3761_p8 = scmp.lt.u32.totalorder %s3759_s28, %s3754_s9 }
 0x190   : > { %p3757_p12 = pnand %p3755_p10, %p5327_p4  ;;  %p3763_p6 = scmp.lt.u32.totalorder %s3754_s9, %s4623_s19 }
 0x191   : > { %p3762_p0 = por %p3761_p8, %p3760_p9 }
 0x192   : > { %p3758_p11 = pneg %p3757_p12 }
 0x193   : > { %p3764_p5 = por %p3763_p6, %p3762_p0 }
 0x195   : > { %p3765_p3 = pnand %p3764_p5, %p3758_p11 }
 0x197   : > { %3768 = shalt.err (!%p3765_p3)
}
 0x198   : > { %s3769_s4 = scalar_lea.vmem %s4625_s6, 1024  ;;  %s4024_s30 = smov [#allocation18]  }
 0x199   : > { %p3770_p13 = scmp.ne.s32.totalorder %s4625_s6, %s3769_s4  ;;  %s3774_s7 = sshll.u32 %s4024_s30, 4  ;;  %s3775_s7 = int_to_ptr.vmem [resolvable:$false] %s3774_s7 }
 0x19a   : > { %s3776_s10 = scalar_lea.vmem %s3775_s7, 2048  ;;  %p3777_p12 = scmp.lt.s32.totalorder %s4625_s6, %s3775_s7 }
 0x19b   : > { %p3772_p7 = pnand %p3770_p13, %p5327_p4  ;;  %p3778_p2 = scmp.lt.s32.totalorder %s3776_s10, %s3769_s4 }
 0x19d   : > { %p3773_p10 = pneg %p3772_p7  ;;  %p3779_p9 = por %p3778_p2, %p3777_p12 }
 0x19f   : > { %p3780_p8 = pnand %p3779_p9, %p3773_p10 }
 0x1a1   : > { %3783 = shalt.err (!%p3780_p8)
}
 0x1a2   : > { %p5328_p11 = scmp.ne.s32.totalorder %s5295_s12, 0  ;;  %s4025_s11 = smov [#allocation20]  }
 0x1a3   : > { %s502_s9 = sshll.u32 %s4025_s11, 4  ;;  %s4026_s23 = smov [#allocation21]   ;;  %s503_s9 = int_to_ptr.vmem [resolvable:$true] %s502_s9 }
 0x1a4   : > { %3219 = dma.hbm_to_vmem [thread:$0]  (!%p5328_p11), %s4623_s19, 1024, %s4625_s6, %s4265_s21, %s5305_s22, %s5305_s22, %s5313_s16  }
 0x1a5   : > { %s513_s3 = sshll.u32 %s4026_s23, 4  ;;  %s5329_s5 = sld [smem:[#allocation58_spill]]  ;;  %s514_s3 = int_to_ptr.vmem [resolvable:$true] %s513_s3 }
 0x1ab   : > { %s3784_s4 = scalar_lea.hbm %s5329_s5, 16 }
 0x1ac   : > { %p3785_p2 = scmp.ne.s32.totalorder %s5329_s5, %s3784_s4  ;;  %p3791_p5 = scmp.lt.u32.totalorder %s3784_s4, %s5329_s5 }
 0x1ae   : > { %p3787_p0 = pnand %p3785_p2, %p4635_p1 }
 0x1b0   : > { %p3788_p6 = pneg %p3787_p0 }
 0x1b2   : > { %p3793_p3 = pnand %p3791_p5, %p3788_p6 }
 0x1b4   : > { %3796 = shalt.err (!%p3793_p3)
}
 0x1b5   : > { %s3797_s6 = scalar_lea.vmem %s503_s9, 16  ;;  %s3804_s22 = scalar_lea.vmem %s503_s9, 32 }
 0x1b6   : > { %p3798_p13 = scmp.ne.s32.totalorder %s503_s9, %s3797_s6  ;;  %p3805_p12 = scmp.lt.s32.totalorder %s503_s9, %s503_s9 }
 0x1b7   : > { %p3806_p9 = scmp.lt.s32.totalorder %s3804_s22, %s3797_s6 }
 0x1b8   : > { %p3800_p7 = pnand %p3798_p13, %p4635_p1 }
 0x1b9   : > { %p3807_p8 = por %p3806_p9, %p3805_p12 }
 0x1ba   : > { %p3801_p10 = pneg %p3800_p7 }
 0x1bc   : > { %p3808_p11 = pnand %p3807_p8, %p3801_p10 }
 0x1be   : > { %3811 = shalt.err (!%p3808_p11)
}
 0x1bf   : > { %p5330_p2 = scmp.ne.s32.totalorder %s5323_s13, 0  ;;  %s5331_s23 = sld [smem:[#allocation59_spill]] }
 0x1c1   : > { %3179 = dma.hbm_to_vmem [thread:$0]  (!%p5330_p2), %s5329_s5, 16, %s503_s9, [#allocation7]  }
 0x1c5   : > { %s5332_s2 = smov %s5331_s23  ;;  %s3812_s28 = scalar_lea.hbm %s5331_s23, 16 }
 0x1c6   : > { %p3813_p0 = scmp.ne.s32.totalorder %s5332_s2, %s3812_s28  ;;  %p3819_p11 = scmp.lt.u32.totalorder %s3812_s28, %s5332_s2 }
 0x1c8   : > { %p3815_p6 = pnand %p3813_p0, %p4635_p1 }
 0x1ca   : > { %p3816_p5 = pneg %p3815_p6 }
 0x1cc   : > { %p3821_p3 = pnand %p3819_p11, %p3816_p5 }
 0x1ce   : > { %3824 = shalt.err (!%p3821_p3)
}
 0x1cf   : > { %s3825_s6 = scalar_lea.vmem %s514_s3, 16  ;;  %s3832_s9 = scalar_lea.vmem %s514_s3, 32 }
 0x1d0   : > { %p3826_p13 = scmp.ne.s32.totalorder %s514_s3, %s3825_s6  ;;  %p3833_p12 = scmp.lt.s32.totalorder %s514_s3, %s514_s3 }
 0x1d1   : > { %p3834_p9 = scmp.lt.s32.totalorder %s3832_s9, %s3825_s6 }
 0x1d2   : > { %p3828_p7 = pnand %p3826_p13, %p4635_p1 }
 0x1d3   : > { %p3835_p8 = por %p3834_p9, %p3833_p12 }
 0x1d4   : > { %p3829_p10 = pneg %p3828_p7 }
 0x1d6   : > { %p3836_p4 = pnand %p3835_p8, %p3829_p10 }
 0x1d8   : > { %3839 = shalt.err (!%p3836_p4)
}
 0x1d9   : > { %3182 = dma.hbm_to_vmem [thread:$0]  (!%p5330_p2), %s5332_s2, 16, %s514_s3, [#allocation22]  }
 0x1da   : > { %s5333_s29 = sld [smem:[#allocation57_spill]]  ;;  %s748_s28 = scalar_lea.vmem [#allocation19], %s4257_s20 }
 0x1db   : > { %s755_s4 = sshll.u32 %s748_s28, 4  ;;  %p5335_p4 = scmp.ne.s32.totalorder %s5297_s27, 0  ;;  %s756_s4 = int_to_ptr.vmem [resolvable:$true] %s755_s4 }
 0x1e0   : > { %s5334_s11 = smov %s5333_s29  ;;  %s4716_s23 = scalar_lea.hbm %s5333_s29, %s4294_s15 }
 0x1e1   : > { %s3840_s13 = scalar_lea.hbm %s4716_s23, 16  ;;  %s3845_s3 = scalar_lea.hbm %s5334_s11, 32 }
 0x1e2   : > { %p3841_p1 = scmp.ne.s32.totalorder %s4716_s23, %s3840_s13  ;;  %p3846_p2 = scmp.lt.u32.totalorder %s4716_s23, %s5334_s11 }
 0x1e3   : > { %p3847_p5 = scmp.lt.u32.totalorder %s3845_s3, %s3840_s13  ;;  %p3849_p3 = scmp.lt.u32.totalorder %s3840_s13, %s4716_s23 }
 0x1e4   : > { %p3843_p0 = pnand %p3841_p1, %p5335_p4 }
 0x1e5   : > { %p3848_p11 = por %p3847_p5, %p3846_p2 }
 0x1e6   : > { %p3844_p6 = pneg %p3843_p0 }
 0x1e7   : > { %p3850_p13 = por %p3849_p3, %p3848_p11 }
 0x1e9   : > { %p3851_p7 = pnand %p3850_p13, %p3844_p6 }
 0x1eb   : > { %3854 = shalt.err (!%p3851_p7)
}
 0x1ec   : > { %s3855_s20 = scalar_lea.vmem %s756_s4, 16  ;;  %s4027_s15 = smov [#allocation19]  }
 0x1ed   : > { %p3856_p10 = scmp.ne.s32.totalorder %s756_s4, %s3855_s20  ;;  %s3860_s9 = sshll.u32 %s4027_s15, 4  ;;  %s3861_s9 = int_to_ptr.vmem [resolvable:$false] %s3860_s9 }
 0x1ee   : > { %s3862_s22 = scalar_lea.vmem %s3861_s9, 32  ;;  %p3863_p8 = scmp.lt.s32.totalorder %s756_s4, %s3861_s9 }
 0x1ef   : > { %p3858_p12 = pnand %p3856_p10, %p5335_p4  ;;  %p3864_p1 = scmp.lt.s32.totalorder %s3862_s22, %s3855_s20 }
 0x1f1   : > { %p3859_p9 = pneg %p3858_p12  ;;  %p3865_p0 = por %p3864_p1, %p3863_p8 }
 0x1f3   : > { %p3866_p2 = pnand %p3865_p0, %p3859_p9 }
 0x1f5   : > { %3869 = shalt.err (!%p3866_p2)
}
 0x1f6   : > { %p5336_p5 = scmp.ne.s32.totalorder %s5295_s12, 0  ;;  %p5337_p6 = scmp.ne.s32.totalorder %s5322_s26, 0 }
 0x1f7   : > { %s766_s27 = sand.u32 (!%p5337_p6), 1, %s4178_s17   ;;  %s768_s16 = sand.u32 (!%p5337_p6), 1, %s3984_s25  }
 0x1f8   : > { %3222 = dma.hbm_to_vmem [thread:$0]  (!%p5336_p5), %s4716_s23, 16, %s756_s4, %s4265_s21  }
 0x1f9   : > { %764 = sbr.rel (%p5337_p6) target bundleno = 3695 (0xe6f), region = 84  ;;  %s4743_s19 = sshll.u32 (!%p5337_p6), %s768_s16, 3 }
 0x1fa   : > { %s767_s1 = scalar_lea.sflag (!%p5337_p6), [#allocation4], %s766_s27  ;;  %s770_s29 = scalar_lea.vmem (!%p5337_p6), [#allocation3], %s4743_s19 }
 0x1fb   : > { %p5338_p4 = scmp.ne.s32.totalorder (!%p5337_p6), %s5319_s14, 0 }
 0x200   : > { %3943 = dma.done.wait (%p5338_p4), %s767_s1, 128  }
 0x201   : > { %3945 = vsyncadd (%p5338_p4), %s767_s1, 4294967168  ;;  %p5339_p11 = scmp.eq.s32.totalorder %s4178_s17, 0 }
 0x203   : > { %3947 = dma.done.wait (%p5339_p11), [#allocation7], 128   ;;  %p5340_p3 = pmov %p5339_p11 }
 0x204   : > { %s5341_s12 = sld [smem:[#allocation31_spill]]  ;;  %p5342_p13 = scmp.ne.s32.totalorder %s5321_s18, 0 }
 0x205   : > { %3949 = vsyncadd (%p5340_p3), [#allocation7], 4294967168 }
 0x20a   : > { %s4755_s21 = sand.u32 1, %s5341_s12  }
 0x20b   : > { %s782_s26 = scalar_lea.vmem [#allocation8], %s4755_s21 }
 0x20c   : > { %3951 = dma.done.wait (%p5342_p13), %s767_s1, 1920  }
 0x20d   : > { %3953 = vsyncadd (%p5342_p13), %s767_s1, 4294965376  ;;  %s4763_s14 = sshll.u32 %s4755_s21, 4  ;;  %s2861_s23 = sshll.u32 %s4755_s21, 6 }
 0x20e   : > { %s790_s28 = scalar_lea.vmem [#allocation9], %s4755_s21  ;;  %s799_s4 = scalar_lea.vmem [#allocation10], %s4763_s14 }
 0x20f   : > { %s807_s18 = scalar_lea.vmem [#allocation11], %s4755_s21  ;;  %s4770_s13 = scalar_lea.vmem [#allocation12], %s4763_s14 }
 0x210   : > { %s824_s30 = scalar_lea.vmem [#allocation13], %s4755_s21  ;;  %s832_s7 = scalar_lea.vmem [#allocation14], %s4755_s21 }
 0x211   : > { %s840_s3 = scalar_lea.vmem [#allocation15], %s4755_s21  ;;  %s849_s10 = scalar_lea.vmem [#allocation16], %s4763_s14 }
 0x212   : > { %s857_s6 = scalar_lea.vmem [#allocation17], %s4755_s21  ;;  %s4777_s20 = scalar_lea.vmem [#allocation18], %s2861_s23 }
 0x213   : > { %s874_s15 = scalar_lea.vmem [#allocation19], %s4755_s21  ;;  %p5343_p7 = pmov %p5340_p3 }
 0x214   : > { %p5344_p10 = pmov %p5340_p3 }
 0x215   : > { %3955 = dma.done.wait (%p5343_p7), [#allocation7], 16  }
 0x216   : > { %3957 = vsyncadd (%p5344_p10), [#allocation7], 4294967280  ;;  %p5345_p12 = pmov %p5340_p3 }
 0x217   : > { %p5346_p9 = pmov %p5340_p3 }
 0x218   : > { %3959 = dma.done.wait (%p5345_p12), [#allocation22], 16  }
 0x219   : > { %3961 = vsyncadd (%p5346_p9), [#allocation22], 4294967280  ;;  %s982_s9 = scalar_lea.vmem [#allocation23], %s4743_s19  ;;  %s5347_s22 = sld [smem:[#allocation34_spill]] }
 0x21f   : > { %p2865_p8 = scmp.ne.s32.totalorder %s5347_s22, 0 }
 0x220   : > { %v988_v0 = vld [vmem:[%s770_s29] sm:$0xff] (!%p2865_p8)  ;;  %v989_v1 = vld [vmem:[#allocation6] sm:$0xff] (!%p2865_p8)  ;;  %vm991_vm0 = vcmask (!%p2865_p8), 261120  }
 0x221   : > { %987 = sbr.rel (%p2865_p8) target bundleno = 552 (0x228), region = 152  ;;  %v990_v2 = vadd.f32 (!%p2865_p8), %v989_v1, %v988_v0 }
 0x223   : > { %992 = vst.msk [vmem:[#allocation2] sm:$0xff] (!%p2865_p8), %vm991_vm0, %v990_v2 }
 0x228 PF: > { %vm996_vm1 = vcmask 261120   ;;  %v3336_v10 = vld [vmem:[%s799_s4] sm:$0xff]   ;;  %v4028_v11 = vmov 0.0   ;;  %vm4029_vm2 = vmmov 0   ;;  %v3337_v12 = vld [vmem:[%s799_s4 + $0x8] sm:$0xff]   ;;  %s4030_s17 = smov 104   ;;  %v1106_v46 = vlaneseq }
 0x229   : > { %2977 = vmatprep.subr.bf16.mxu1 %v4028_v11  ;;  %2981 = vmatprep.mubr.msk.bf16.mxu1 %vm4029_vm2, %v4028_v11  ;;  %v2866_v17 = vld [vmem:[%s782_s26] ss:$0 sm:$0xff]  ;;  %s4031_s27 = smov 120   ;;  %s4032_s1 = smov 112   ;;  %vm1115_vm3 = vcmask 64512   ;;  %vm1375_vm4 = vcmask 1041408  }
 0x22a   : > { %v4790_v3 = vld [vmem:[#allocation2] sm:$0xff]  ;;  %2978 = vmatpush3.bf16.msra.mxu1 %v3336_v10  ;;  %3003 = vmatprep.subr.bf16.mxu0 %v4028_v11  ;;  %s4033_s29 = smov 96   ;;  %s4034_s12 = smov 64   ;;  %v4861_v47 = vshrl.u32 %v1106_v46, 7  ;;  %v4863_v48 = vand.u32 127, %v1106_v46  ;;  %v4035_v49 = vmov -10000.0  }
 0x22b   : > { %v997_v4 = vsel %vm996_vm1, %v4790_v3, 0.0  ;;  %2979 = vmatprep.subr.bf16.mxu1 %v4028_v11  ;;  %3005 = vmatprep.mubr.msk.bf16.mxu0 %vm4029_vm2, %v4028_v11  ;;  %v2867_v19 = vld [vmem:[%s790_s28] ss:$0 sm:$0xff]  ;;  %vm1309_vm6 = vcmask 31744   ;;  %vm2036_vm8 = vcmask 1043456   ;;  %s5348_s26 = sld [smem:[#allocation34_spill]] }
 0x22c   : > { %998 = vadd.xlane.f32.xlu0 %v997_v4  ;;  %v2868_v23 = vld [vmem:[%s807_s18] ss:$0 sm:$0xff]  ;;  %vm1110_vm5 = vcmp.ge.s32.totalorder %v4861_v47, %v4863_v48 }
 0x22d   : > { %v1111_v50 = vsel %vm1110_vm5, 0.0, %v4035_v49 }
 0x22e   : > { %2980 = vmatpush3.bf16.msra.mxu1 %v3337_v12 }
 0x22f   : > { %2985 = vmatprep.subr.bf16.mxu1 %v4028_v11 }
 0x231   : > { %p2911_p1 = scmp.ne.s32.totalorder %s5348_s26, 1 }
 0x2b9   : > { %v999_v5 = vpop.xlane.xlu0 %998 }
 0x2ba   : > { %v1001_v6 = vmul.f32 0.03125, %v999_v5 }
 0x2bc   : > { %v1002_v7 = vsub.f32 %v4790_v3, %v1001_v6 }
 0x2be   : > { %v1003_v8 = vmul.f32 %v1002_v7, %v1002_v7 }
 0x2c0   : > { %v1004_v9 = vsel %vm996_vm1, %v1003_v8, 0.0 }
 0x2c1   : > { %1005 = vadd.xlane.f32.xlu0 %v1004_v9 }
 0x34e   : > { %v1006_v13 = vpop.xlane.xlu0 %1005 }
 0x34f   : > { %v1007_v14 = vmul.f32 0.03125, %v1006_v13 }
 0x351   : > { %v1008_v15 = vadd.f32 1e-05, %v1007_v14 }
 0x353   : > { %3348 = vrsqrt.f32 %v1008_v15 }
 0x35d   : > { %v3349_v16 = vpop.eup %3348 }
 0x35e   : > { %v1010_v18 = vmul.f32 %v3349_v16, %v1002_v7 }
 0x360   : > { %v1017_v20 = vmul.f32 %v2866_v17, %v1010_v18 }
 0x362   : > { %v1024_v21 = vadd.f32 %v2867_v19, %v1017_v20 }
 0x364   : > { %v1025_v22 = vpack.c.bf16 %v1024_v21, %v1024_v21 }
 0x366   : > { %2982 = vmatmul.mubr.msk.bf16.vlgmr.msra.gmra.mrb[0].mxu1 %vm996_vm1, %v1025_v22 }
 0x367   : > { %2987 = vmatprep.mubr.msk.bf16.mxu1 %vm4029_vm2, %v4028_v11 }
 0x439   : > { %v1086_v24 = vpop.f32.mrb[0].mxu1 }
 0x43a   : > { %v1087_v25 = vadd.f32 %v2868_v23, %v1086_v24  ;;  %v2983_v26 = vpop.f32.mrb[1].mxu1 }
 0x43b   : > { %v1089_v27 = vpop.f32.mrb[2].mxu1 }
 0x43c   : > { %1099 = vrot.lane.b32.xlu0 %v1087_v25, %s4030_s17  ;;  %1093 = vrot.lane.b32.xlu1 %v1087_v25, %s4031_s27  ;;  %v2984_v28 = vpop.f32.mrb[3].mxu1  ;;  %v4817_v29 = vpack.c.bf16 %v1087_v25, %v1087_v25 }
 0x43e   : > { %v1570_v13 = vrot.slane %v4817_v29, 2 }
 0x440   : > { %1096 = vrot.lane.b32.xlu1 %v1087_v25, %s4032_s1 }
 0x444   : > { %1113 = vrot.lane.b32.xlu1 %v4817_v29, %s4033_s29 }
 0x4ae   : > { %v1094_v30 = vpop.permute.xlu1 %1093  ;;  %v1100_v34 = vpop.permute.xlu0 %1099 }
 0x4af   : > { %v4821_v31 = vpack.c.bf16 %v1094_v30, %v1094_v30  ;;  %v4829_v36 = vpack.c.bf16 %v1100_v34, %v1100_v34 }
 0x4b1   : > { %1163 = vrot.lane.b32.xlu1 %v4821_v31, %s4033_s29  ;;  %v1616_v10 = vrot.slane %v4821_v31, 2  ;;  %v1708_v12 = vrot.slane %v4829_v36, 2 }
 0x4b2   : > { %v1097_v32 = vpop.permute.xlu1 %1096 }
 0x4b3   : > { %v4825_v33 = vpack.c.bf16 %v1097_v32, %v1097_v32 }
 0x4b5   : > { %1212 = vrot.lane.b32.xlu1 %v4825_v33, %s4033_s29  ;;  %v1662_v23 = vrot.slane %v4825_v33, 2 }
 0x4b6   : > { %v1114_v35 = vpop.permute.xlu1 %1113 }
 0x4b7   : > { %v1120_v37 = vsel %vm1115_vm3, %v1114_v35, 0 }
 0x4b8   : > { %2986 = vmatpush3.bf16.xpose.msra.mxu1 %v1120_v37 }
 0x4b9   : > { %1261 = vrot.lane.b32.xlu1 %v4829_v36, %s4033_s29  ;;  %2991 = vmatprep.subr.bf16.mxu1 %v4028_v11 }
 0x4bd   : > { %1370 = vrot.lane.b32.xlu1 %v4817_v29, %s4034_s12 }
 0x4bf   : > { %2988 = vmatmul.mubr.msk.bf16.vlgmr.msra.gmra.mrb[4].mxu1 %vm1115_vm3, %v4817_v29 }
 0x4c0   : > { %2993 = vmatprep.mubr.msk.bf16.mxu1 %vm4029_vm2, %v4028_v11 }
 0x523   : > { %v1164_v38 = vpop.permute.xlu1 %1163 }
 0x524   : > { %v1169_v39 = vsel %vm1115_vm3, %v1164_v38, 0 }
 0x525   : > { %2992 = vmatpush3.bf16.xpose.msra.mxu1 %v1169_v39 }
 0x526   : > { %2997 = vmatprep.subr.bf16.mxu1 %v4028_v11 }
 0x527   : > { %v1213_v40 = vpop.permute.xlu1 %1212 }
 0x528   : > { %v1218_v42 = vsel %vm1115_vm3, %v1213_v40, 0 }
 0x52b   : > { %v1262_v41 = vpop.permute.xlu1 %1261 }
 0x52c   : > { %2994 = vmatmul.mubr.msk.bf16.vlgmr.msra.gmra.mrb[8].mxu1 %vm1115_vm3, %v4821_v31  ;;  %v1267_v43 = vsel %vm1115_vm3, %v1262_v41, 0 }
 0x52d   : > { %2998 = vmatpush3.bf16.xpose.msra.mxu1 %v1218_v42  ;;  %3004 = vmatpush3.bf16.xpose.msra.mxu0 %v1267_v43 }
 0x52e   : > { %2999 = vmatprep.mubr.msk.bf16.mxu1 %vm4029_vm2, %v4028_v11  ;;  %3009 = vmatprep.subr.bf16.mxu1 %v4028_v11 }
 0x52f   : > { %3015 = vmatprep.subr.bf16.mxu0 %v4028_v11  ;;  %v1371_v44 = vpop.permute.xlu1 %1370 }
 0x530   : > { %v1377_v45 = vsel %vm1375_vm4, %v1371_v44, 0 }
 0x534   : > { %3000 = vmatmul.mubr.msk.bf16.vlgmr.msra.gmra.mrb[12].mxu1 %vm1115_vm3, %v4825_v33  ;;  %3006 = vmatmul.mubr.msk.bf16.vlgmr.msra.gmra.mrb[0].mxu0 %vm1115_vm3, %v4829_v36 }
 0x535   : > { %3010 = vmatpush3.bf16.msra.mxu1 %v1377_v45  ;;  %3011 = vmatprep.mubr.msk.bf16.mxu1 %vm4029_vm2, %v4028_v11 }
 0x536   : > { %3021 = vmatprep.subr.bf16.mxu1 %v4028_v11  ;;  %3017 = vmatprep.mubr.msk.bf16.mxu0 %vm4029_vm2, %v4028_v11 }
 0x592   : > { %v1156_v51 = vpop.f32.mrb[4].mxu1 }
 0x593   : > { %v1157_v52 = vadd.f32 %v1156_v51, %v1111_v50  ;;  %v2989_v53 = vpop.f32.mrb[5].mxu1 }
 0x594   : > { %v1159_v54 = vpop.f32.mrb[6].mxu1 }
 0x595   : > { %v2990_v55 = vpop.f32.mrb[7].mxu1  ;;  %v1310_v56 = vsel %vm1309_vm6, %v1157_v52, -inf }
 0x596   : > { %1311 = vmax.xlane.f32.xlu1 %v1310_v56 }
 0x5a7   : > { %1467 = vrot.lane.b32.xlu1 %v4825_v33, %s4034_s12 }
 0x5ab   : > { %1515 = vrot.lane.b32.xlu1 %v4829_v36, %s4034_s12 }
 0x5ff   : > { %v1205_v57 = vpop.f32.mrb[8].mxu1 }
 0x600   : > { %v1206_v58 = vadd.f32 %v1205_v57, %v1111_v50  ;;  %v2995_v59 = vpop.f32.mrb[9].mxu1 }
 0x601   : > { %v1208_v60 = vpop.f32.mrb[10].mxu1 }
 0x602   : > { %v2996_v61 = vpop.f32.mrb[11].mxu1  ;;  %v1313_v62 = vsel %vm1309_vm6, %v1206_v58, -inf }
 0x603   : > { %1314 = vmax.xlane.f32.xlu0 %v1313_v62 }
 0x607   : > { %v1254_v63 = vpop.f32.mrb[12].mxu1  ;;  %v1303_v0 = vpop.f32.mrb[0].mxu0 }
 0x608   : > { %v1255_v1 = vadd.f32 %v1254_v63, %v1111_v50  ;;  %v3001_v2 = vpop.f32.mrb[13].mxu1  ;;  %v3007_v4 = vpop.f32.mrb[1].mxu0  ;;  %v1304_v19 = vadd.f32 %v1303_v0, %v1111_v50 }
 0x609   : > { %v1257_v5 = vpop.f32.mrb[14].mxu1  ;;  %v1306_v6 = vpop.f32.mrb[2].mxu0 }
 0x60a   : > { %v3002_v7 = vpop.f32.mrb[15].mxu1  ;;  %v3008_v8 = vpop.f32.mrb[3].mxu0  ;;  %v1316_v9 = vsel %vm1309_vm6, %v1255_v1, -inf  ;;  %v1319_v22 = vsel %vm1309_vm6, %v1304_v19, -inf }
 0x60b   : > { %1317 = vmax.xlane.f32.xlu1 %v1316_v9  ;;  %v1567_v8 = vadd.s32 4, %v4863_v48 }
 0x60d   : > { %vm1568_vm7 = vcmp.ge.s32.totalorder %v4861_v47, %v1567_v8 }
 0x60e   : > { %v1569_v9 = vsel %vm1568_vm7, 0.0, %v4035_v49 }
 0x619   : > { %1419 = vrot.lane.b32.xlu0 %v4821_v31, %s4034_s12 }
 0x61c   : > { %1617 = vrot.lane.b32.xlu1 %v1616_v10, %s4033_s29 }
 0x620   : > { %1709 = vrot.lane.b32.xlu1 %v1708_v12, %s4033_s29 }
 0x623   : > { %v4886_v14 = vpop.xlane.xlu1 %1311 }
 0x624   : > { %v1334_v15 = vsub.f32 %v1157_v52, %v4886_v14  ;;  %1822 = vrot.lane.b32.xlu1 %v1570_v13, %s4034_s12 }
 0x626   : > { %v1338_v16 = vmul.f32 1.442695, %v1334_v15 }
 0x627   : > { %v1468_v18 = vpop.permute.xlu1 %1467 }
 0x628   : > { %3350 = vpow2.f32 %v1338_v16  ;;  %v1473_v21 = vsel %vm1375_vm4, %v1468_v18, 0 }
 0x62b   : > { %v1516_v27 = vpop.permute.xlu1 %1515 }
 0x62c   : > { %v1521_v39 = vsel %vm1375_vm4, %v1516_v27, 0 }
 0x632   : > { %v4890_v17 = vpop.eup %3350 }
 0x633   : > { %v1366_v20 = vpack.c.bf16 %v4890_v17, %v4890_v17 }
 0x635   : > { %3012 = vmatmul.mubr.msk.bf16.vlgmr.msra.gmra.mrb[16].mxu1 %vm1309_vm6, %v1366_v20 }
 0x636   : > { %3022 = vmatpush3.bf16.msra.mxu1 %v1473_v21  ;;  %3023 = vmatprep.mubr.msk.bf16.mxu1 %vm4029_vm2, %v4028_v11 }
 0x637   : > { %3033 = vmatprep.subr.bf16.mxu1 %v4028_v11 }
 0x638   : > { %1320 = vmax.xlane.f32.xlu0 %v1319_v22 }
 0x64e   : > { %1571 = vrot.lane.b32.xlu0 %v1570_v13, %s4033_s29 }
 0x652   : > { %1663 = vrot.lane.b32.xlu0 %v1662_v23, %s4033_s29 }
 0x690   : > { %v4905_v24 = vpop.xlane.xlu0 %1314 }
 0x691   : > { %v1335_v25 = vsub.f32 %v1206_v58, %v4905_v24 }
 0x693   : > { %v1340_v26 = vmul.f32 1.442695, %v1335_v25 }
 0x694   : > { %v1420_v28 = vpop.permute.xlu0 %1419 }
 0x695   : > { %3352 = vpow2.f32 %v1340_v26  ;;  %v1425_v30 = vsel %vm1375_vm4, %v1420_v28, 0 }
 0x696   : > { %3016 = vmatpush3.bf16.msra.mxu0 %v1425_v30 }
 0x697   : > { %3027 = vmatprep.subr.bf16.mxu0 %v4028_v11 }
 0x698   : > { %v4910_v32 = vpop.xlane.xlu1 %1317 }
 0x699   : > { %v1336_v34 = vsub.f32 %v1255_v1, %v4910_v32 }
 0x69b   : > { %v1342_v35 = vmul.f32 1.442695, %v1336_v34 }
 0x69c   : > { %v1618_v50 = vpop.permute.xlu1 %1617 }
 0x69d   : > { %3354 = vpow2.f32 %v1342_v35  ;;  %v1620_v56 = vsel %vm1115_vm3, %v1618_v50, 0 }
 0x69f   : > { %v4913_v37 = vpop.eup %3352 }
 0x6a0   : > { %v1367_v38 = vpack.c.bf16 %v4913_v37, %v4913_v37  ;;  %v1710_v52 = vpop.permute.xlu1 %1709 }
 0x6a1   : > { %v1712_v58 = vsel %vm1115_vm3, %v1710_v52, 0 }
 0x6a2   : > { %3018 = vmatmul.mubr.msk.bf16.vlgmr.msra.gmra.mrb[4].mxu0 %vm1309_vm6, %v1367_v38 }
 0x6a3   : > { %3028 = vmatpush3.bf16.msra.mxu0 %v1521_v39  ;;  %3029 = vmatprep.mubr.msk.bf16.mxu0 %vm4029_vm2, %v4028_v11 }
 0x6a4   : > { %3039 = vmatprep.subr.bf16.mxu0 %v4028_v11  ;;  %v1823_v57 = vpop.permute.xlu1 %1822 }
 0x6a7   : > { %v4922_v40 = vpop.eup %3354 }
 0x6a8   : > { %v1368_v41 = vpack.c.bf16 %v4922_v40, %v4922_v40 }
 0x6aa   : > { %3024 = vmatmul.mubr.msk.bf16.vlgmr.msra.gmra.mrb[20].mxu1 %vm1309_vm6, %v1368_v41 }
 0x6ab   : > { %3035 = vmatprep.mubr.msk.bf16.mxu1 %vm4029_vm2, %v4028_v11 }
 0x6c5   : > { %v4929_v42 = vpop.xlane.xlu0 %1320 }
 0x6c6   : > { %v1337_v43 = vsub.f32 %v1304_v19, %v4929_v42 }
 0x6c8   : > { %v1344_v44 = vmul.f32 1.442695, %v1337_v43 }
 0x6c9   : > { %v1572_v45 = vpop.permute.xlu0 %1571 }
 0x6ca   : > { %3356 = vpow2.f32 %v1344_v44  ;;  %v1574_v46 = vsel %vm1115_vm3, %v1572_v45, 0 }
 0x6cb   : > { %3034 = vmatpush3.bf16.xpose.msra.mxu1 %v1574_v46 }
 0x6cc   : > { %3045 = vmatprep.subr.bf16.mxu1 %v4028_v11 }
 0x6cd   : > { %v1664_v51 = vpop.permute.xlu0 %1663 }
 0x6ce   : > { %v1666_v53 = vsel %vm1115_vm3, %v1664_v51, 0 }
 0x6d2   : > { %3036 = vmatmul.mubr.msk.bf16.vlgmr.msra.gmra.mrb[24].mxu1 %vm1115_vm3, %v4817_v29  ;;  %v1828_v29 = vsel %vm1375_vm4, %v1823_v57, 0 }
 0x6d3   : > { %3046 = vmatpush3.bf16.xpose.msra.mxu1 %v1666_v53  ;;  %3047 = vmatprep.mubr.msk.bf16.mxu1 %vm4029_vm2, %v4028_v11  ;;  %v1350_v53 = vsel %vm1309_vm6, %v4890_v17, 0.0 }
 0x6d4   : > { %v4939_v54 = vpop.eup %3356  ;;  %3057 = vmatprep.subr.bf16.mxu1 %v4028_v11 }
 0x6d5   : > { %v1369_v55 = vpack.c.bf16 %v4939_v54, %v4939_v54 }
 0x6d7   : > { %3030 = vmatmul.mubr.msk.bf16.vlgmr.msra.gmra.mrb[8].mxu0 %vm1309_vm6, %v1369_v55  ;;  %v1356_v55 = vsel %vm1309_vm6, %v4922_v40, 0.0 }
 0x6d8   : > { %3040 = vmatpush3.bf16.xpose.msra.mxu0 %v1620_v56  ;;  %3041 = vmatprep.mubr.msk.bf16.mxu0 %vm4029_vm2, %v4028_v11  ;;  %v1353_v56 = vsel %vm1309_vm6, %v4913_v37, 0.0 }
 0x6d9   : > { %3051 = vmatprep.subr.bf16.mxu0 %v4028_v11 }
 0x6da   : > { %3048 = vmatmul.mubr.msk.bf16.vlgmr.msra.gmra.mrb[28].mxu1 %vm1115_vm3, %v4825_v33  ;;  %v1322_v33 = vsub.f32 -inf, %v4886_v14 }
 0x6db   : > { %3058 = vmatpush3.bf16.msra.mxu1 %v1828_v29  ;;  %3059 = vmatprep.mubr.msk.bf16.mxu1 %vm4029_vm2, %v4028_v11 }
 0x6dc   : > { %3069 = vmatprep.subr.bf16.mxu1 %v4028_v11 }
 0x6df   : > { %3042 = vmatmul.mubr.msk.bf16.vlgmr.msra.gmra.mrb[12].mxu0 %vm1115_vm3, %v4821_v31 }
 0x6e0   : > { %3052 = vmatpush3.bf16.xpose.msra.mxu0 %v1712_v58  ;;  %3053 = vmatprep.mubr.msk.bf16.mxu0 %vm4029_vm2, %v4028_v11  ;;  %v1323_v58 = vsub.f32 -inf, %v4905_v24 }
 0x6e1   : > { %3063 = vmatprep.subr.bf16.mxu0 %v4028_v11 }
 0x6e7   : > { %3054 = vmatmul.mubr.msk.bf16.vlgmr.msra.gmra.mrb[16].mxu0 %vm1115_vm3, %v4829_v36  ;;  %v1326_v36 = vmul.f32 1.442695, %v1322_v33 }
 0x6e8   : > { %3065 = vmatprep.mubr.msk.bf16.mxu0 %vm4029_vm2, %v4028_v11 }
 0x6e9   : > { %3358 = vpow2.f32 %v1326_v36 }
 0x708   : > { %v4965_v59 = vpop.f32.mrb[16].mxu1 }
 0x709   : > { %v3013_v60 = vpop.f32.mrb[17].mxu1 }
 0x70a   : > { %v1416_v61 = vpop.f32.mrb[18].mxu1 }
 0x70b   : > { %v3014_v62 = vpop.f32.mrb[19].mxu1  ;;  %v1328_v61 = vmul.f32 1.442695, %v1323_v58 }
 0x70c   : > { %v3359_v62 = vpop.eup %3358 }
 0x775   : > { %v4967_v63 = vpop.f32.mrb[4].mxu0 }
 0x776   : > { %v3019_v0 = vpop.f32.mrb[5].mxu0 }
 0x777   : > { %v1464_v1 = vpop.f32.mrb[6].mxu0 }
 0x778   : > { %v3020_v2 = vpop.f32.mrb[7].mxu0 }
 0x77d   : > { %v4969_v4 = vpop.f32.mrb[20].mxu1 }
 0x77e   : > { %v3025_v5 = vpop.f32.mrb[21].mxu1 }
 0x77f   : > { %v1512_v6 = vpop.f32.mrb[22].mxu1 }
 0x780   : > { %v3026_v7 = vpop.f32.mrb[23].mxu1  ;;  %v1325_v6 = vsub.f32 -inf, %v4929_v42 }
 0x781   : > { %v5006_v7 = vmul.f32 0.0, %v3359_v62 }
 0x7a5   : > { %v1610_v13 = vpop.f32.mrb[24].mxu1 }
 0x7a6   : > { %v1611_v15 = vadd.f32 %v1610_v13, %v1569_v9  ;;  %v3037_v16 = vpop.f32.mrb[25].mxu1 }
 0x7a7   : > { %v1613_v18 = vpop.f32.mrb[26].mxu1 }
 0x7a8   : > { %v3038_v19 = vpop.f32.mrb[27].mxu1  ;;  %v1754_v20 = vsel %vm1309_vm6, %v1611_v15, -inf }
 0x7a9   : > { %1755 = vmax.xlane.f32.xlu0 %v1754_v20  ;;  %v1332_v19 = vmul.f32 1.442695, %v1325_v6 }
 0x7aa   : > { %v4975_v21 = vpop.f32.mrb[8].mxu0 }
 0x7ab   : > { %v3031_v22 = vpop.f32.mrb[9].mxu0 }
 0x7ac   : > { %v1560_v25 = vpop.f32.mrb[10].mxu0 }
 0x7ad   : > { %v3032_v26 = vpop.f32.mrb[11].mxu0  ;;  %v1702_v27 = vpop.f32.mrb[28].mxu1 }
 0x7ae   : > { %v1703_v28 = vadd.f32 %v1702_v27, %v1569_v9  ;;  %v3049_v48 = vpop.f32.mrb[29].mxu1 }
 0x7af   : > { %v1705_v30 = vpop.f32.mrb[30].mxu1 }
 0x7b0   : > { %v3050_v47 = vpop.f32.mrb[31].mxu1  ;;  %v1760_v49 = vsel %vm1309_vm6, %v1703_v28, -inf }
 0x7b1   : > { %1761 = vmax.xlane.f32.xlu0 %v1760_v49 }
 0x7b2   : > { %v1656_v34 = vpop.f32.mrb[12].mxu0 }
 0x7b3   : > { %v1657_v35 = vadd.f32 %v1656_v34, %v1569_v9  ;;  %v3043_v38 = vpop.f32.mrb[13].mxu0 }
 0x7b4   : > { %v1659_v39 = vpop.f32.mrb[14].mxu0 }
 0x7b5   : > { %v3044_v41 = vpop.f32.mrb[15].mxu0  ;;  %v1757_v43 = vsel %vm1309_vm6, %v1657_v35, -inf }
 0x7b6   : > { %1758 = vmax.xlane.f32.xlu1 %v1757_v43 }
 0x7ba   : > { %v1748_v44 = vpop.f32.mrb[16].mxu0 }
 0x7bb   : > { %v4979_v45 = vadd.f32 %v1748_v44, %v1569_v9  ;;  %v3055_v46 = vpop.f32.mrb[17].mxu0  ;;  %v1563_v9 = vadd.f32 %v4965_v59, %v5006_v7 }
 0x7bc   : > { %v1751_v50 = vpop.f32.mrb[18].mxu0 }
 0x7bd   : > { %v3056_v51 = vpop.f32.mrb[19].mxu0  ;;  %v1763_v52 = vsel %vm1309_vm6, %v4979_v45, -inf }
 0x7be   : > { %1764 = vmax.xlane.f32.xlu0 %v1763_v52 }
 0x7c7   : > { %1918 = vrot.lane.b32.xlu1 %v1662_v23, %s4034_s12  ;;  %v1324_v23 = vsub.f32 -inf, %v4910_v32 }
 0x7c9   : > { %v1330_v57 = vmul.f32 1.442695, %v1324_v23 }
 0x7cb   : > { %1966 = vrot.lane.b32.xlu1 %v1708_v12, %s4034_s12 }
 0x7d4   : > { %1870 = vrot.lane.b32.xlu0 %v1616_v10, %s4034_s12 }
 0x7ef   : > { %1351 = vadd.xlane.f32.xlu1 %v1350_v53 }
 0x7f3   : > { %1357 = vadd.xlane.f32.xlu1 %v1356_v55  ;;  %1354 = vadd.xlane.f32.xlu0 %v1353_v56 }
 0x836   : > { %v1756_v12 = vpop.xlane.xlu0 %1755 }
 0x837   : > { %v1766_v31 = vmax.f32 %v4886_v14, %v1756_v12 }
 0x839   : > { %v1770_v10 = vsub.f32 %v4886_v14, %v1766_v31  ;;  %v1782_v17 = vsub.f32 %v1611_v15, %v1766_v31 }
 0x83b   : > { %v1774_v29 = vmul.f32 1.442695, %v1770_v10  ;;  %v1786_v40 = vmul.f32 1.442695, %v1782_v17 }
 0x83d   : > { %3360 = vpow2.f32 %v1774_v29  ;;  %v1359_v29 = vsel %vm1309_vm6, %v4939_v54, 0.0 }
 0x83e   : > { %3362 = vpow2.f32 %v1786_v40  ;;  %v1762_v37 = vpop.xlane.xlu0 %1761 }
 0x83f   : > { %3364 = vpow2.f32 %v1330_v57  ;;  %v1768_v60 = vmax.f32 %v4910_v32, %v1762_v37 }
 0x840   : > { %3366 = vpow2.f32 %v1328_v61 }
 0x841   : > { %v1772_v0 = vsub.f32 %v4910_v32, %v1768_v60  ;;  %v1784_v1 = vsub.f32 %v1703_v28, %v1768_v60  ;;  %v2888_v60 = vld [vmem:[%s4770_s13 + $0x4] sm:$0xf] }
 0x842   : > { %v2038_v54 = vsel %vm2036_vm8, %v2888_v60, 0 }
 0x843   : > { %v1778_v2 = vmul.f32 1.442695, %v1772_v0  ;;  %v1790_v5 = vmul.f32 1.442695, %v1784_v1  ;;  %v1759_v14 = vpop.xlane.xlu1 %1758 }
 0x844   : > { %v1767_v8 = vmax.f32 %v4905_v24, %v1759_v14 }
 0x845   : > { %3368 = vpow2.f32 %v1778_v2 }
 0x846   : > { %3370 = vpow2.f32 %v1790_v5  ;;  %v1771_v13 = vsub.f32 %v4905_v24, %v1767_v8  ;;  %v1783_v15 = vsub.f32 %v1657_v35, %v1767_v8 }
 0x847   : > { %v5012_v32 = vpop.eup %3360  ;;  %v1919_v16 = vpop.permute.xlu1 %1918 }
 0x848   : > { %v3363_v18 = vpop.eup %3362  ;;  %v1776_v20 = vmul.f32 1.442695, %v1771_v13  ;;  %v1788_v22 = vmul.f32 1.442695, %v1783_v15  ;;  %v5015_v25 = vmul.f32 %v5012_v32, %v1563_v9  ;;  %v1924_v27 = vsel %vm1375_vm4, %v1919_v16, 0 }
 0x849   : > { %v3365_v26 = vpop.eup %3364  ;;  %v1818_v28 = vpack.c.bf16 %v3363_v18, %v3363_v18  ;;  %v1798_v23 = vsel %vm1309_vm6, %v3363_v18, 0.0 }
 0x84a   : > { %3372 = vpow2.f32 %v1776_v20  ;;  %v5019_v59 = vmul.f32 0.0, %v3365_v26  ;;  %v3367_v30 = vpop.eup %3366 }
 0x84b   : > { %3374 = vpow2.f32 %v1788_v22  ;;  %3060 = vmatmul.mubr.msk.bf16.vlgmr.msra.gmra.mrb[32].mxu1 %vm1309_vm6, %v1818_v28  ;;  %v1765_v24 = vpop.xlane.xlu0 %1764  ;;  %v1347_v50 = vmul.f32 0.0, %v3367_v30  ;;  %v1967_v53 = vpop.permute.xlu1 %1966 }
 0x84c   : > { %3376 = vpow2.f32 %v1332_v19  ;;  %3070 = vmatpush3.bf16.msra.mxu1 %v1924_v27  ;;  %v1769_v48 = vmax.f32 %v4929_v42, %v1765_v24  ;;  %3071 = vmatprep.mubr.msk.bf16.mxu1 %vm4029_vm2, %v4028_v11  ;;  %v1565_v47 = vadd.f32 %v4969_v4, %v5019_v59  ;;  %v1972_v12 = vsel %vm1375_vm4, %v1967_v53, 0  ;;  %v2893_v24 = vld [vmem:[%s4770_s13 + $0xc] sm:$0xf]  ;;  %v2891_v53 = vld [vmem:[%s4770_s13 + $0x8] sm:$0xf] }
 0x84d   : > { %3081 = vmatprep.subr.bf16.mxu1 %v4028_v11 }
 0x84e   : > { %v1773_v49 = vsub.f32 %v4929_v42, %v1769_v48  ;;  %v1785_v34 = vsub.f32 %v4979_v45, %v1769_v48  ;;  %v1564_v42 = vadd.f32 %v4967_v63, %v1347_v50 }
 0x84f   : > { %v5029_v35 = vpop.eup %3368  ;;  %v1871_v38 = vpop.permute.xlu0 %1870 }
 0x850   : > { %v3371_v39 = vpop.eup %3370  ;;  %v1780_v41 = vmul.f32 1.442695, %v1773_v49  ;;  %v1792_v43 = vmul.f32 1.442695, %v1785_v34  ;;  %v1876_v44 = vsel %vm1375_vm4, %v1871_v38, 0  ;;  %v5033_v46 = vmul.f32 %v5029_v35, %v1565_v47 }
 0x851   : > { %v1804_v51 = vsel %vm1309_vm6, %v3371_v39, 0.0  ;;  %3064 = vmatpush3.bf16.msra.mxu0 %v1876_v44  ;;  %v1820_v4 = vpack.c.bf16 %v3371_v39, %v3371_v39  ;;  %v2181_v49 = vsel %vm2036_vm8, %v2893_v24, 0  ;;  %v3338_v24 = vld [vmem:[%s849_s10] sm:$0xff]  }
 0x852   : > { %3378 = vpow2.f32 %v1780_v41  ;;  %1805 = vadd.xlane.f32.xlu1 %v1804_v51  ;;  %3075 = vmatprep.subr.bf16.mxu0 %v4028_v11 }
 0x853   : > { %3380 = vpow2.f32 %v1792_v43  ;;  %3072 = vmatmul.mubr.msk.bf16.vlgmr.msra.gmra.mrb[36].mxu1 %vm1309_vm6, %v1820_v4 }
 0x854   : > { %v3373_v45 = vpop.eup %3372  ;;  %3083 = vmatprep.mubr.msk.bf16.mxu1 %vm4029_vm2, %v4028_v11  ;;  %3082 = vmatpush3.bf16.msra.mxu1 %v2038_v54 }
 0x855   : > { %v3375_v52 = vpop.eup %3374  ;;  %v5041_v55 = vmul.f32 %v3373_v45, %v1564_v42  ;;  %3093 = vmatprep.subr.bf16.mxu1 %v4028_v11 }
 0x856   : > { %v3377_v56 = vpop.eup %3376  ;;  %v1801_v33 = vsel %vm1309_vm6, %v3375_v52, 0.0  ;;  %v1819_v36 = vpack.c.bf16 %v3375_v52, %v3375_v52 }
 0x857   : > { %1802 = vadd.xlane.f32.xlu0 %v1801_v33  ;;  %v1349_v63 = vmul.f32 0.0, %v3377_v56 }
 0x858   : > { %3066 = vmatmul.mubr.msk.bf16.vlgmr.msra.gmra.mrb[20].mxu0 %vm1309_vm6, %v1819_v36 }
 0x859   : > { %3076 = vmatpush3.bf16.msra.mxu0 %v1972_v12  ;;  %3077 = vmatprep.mubr.msk.bf16.mxu0 %vm4029_vm2, %v4028_v11  ;;  %v1566_v31 = vadd.f32 %v4975_v21, %v1349_v63  ;;  %v2030_v21 = vld [vmem:[%s4770_s13] sm:$0xf] }
 0x85a   : > { %3087 = vmatprep.subr.bf16.mxu0 %v4028_v11  ;;  %v2084_v37 = vsel %vm2036_vm8, %v2030_v21, 0 }
 0x85b   : > { %1799 = vadd.xlane.f32.xlu0 %v1798_v23 }
 0x85c   : > { %v3379_v10 = vpop.eup %3378 }
 0x85d   : > { %v3381_v17 = vpop.eup %3380  ;;  %v5051_v57 = vmul.f32 %v3379_v10, %v1566_v31 }
 0x85e   : > { %v1821_v40 = vpack.c.bf16 %v3381_v17, %v3381_v17  ;;  %v1807_v58 = vsel %vm1309_vm6, %v3381_v17, 0.0 }
 0x85f   : > { %1360 = vadd.xlane.f32.xlu0 %v1359_v29 }
 0x860   : > { %3078 = vmatmul.mubr.msk.bf16.vlgmr.msra.gmra.mrb[24].mxu0 %vm1309_vm6, %v1821_v40 }
 0x861   : > { %3089 = vmatprep.mubr.msk.bf16.mxu0 %vm4029_vm2, %v4028_v11  ;;  %3088 = vmatpush3.bf16.msra.mxu0 %v2084_v37 }
 0x862   : > { %3099 = vmatprep.subr.bf16.mxu0 %v4028_v11 }
 0x863   : > { %1808 = vadd.xlane.f32.xlu0 %v1807_v58 }
 0x87c   : > { %v1352_v62 = vpop.xlane.xlu1 %1351 }
 0x87d   : > { %v1362_v1 = vadd.f32 %v1352_v62, %v5006_v7 }
 0x87f   : > { %v1794_v5 = vmul.f32 %v5012_v32, %v1362_v1 }
 0x880   : > { %v1355_v61 = vpop.xlane.xlu0 %1354  ;;  %v1358_v14 = vpop.xlane.xlu1 %1357 }
 0x881   : > { %v1364_v8 = vadd.f32 %v1358_v14, %v5019_v59  ;;  %v1363_v15 = vadd.f32 %v1355_v61, %v1347_v50 }
 0x883   : > { %v1796_v13 = vmul.f32 %v5029_v35, %v1364_v8  ;;  %v1795_v19 = vmul.f32 %v3373_v45, %v1363_v15  ;;  %v2895_v8 = vld [vmem:[%s824_s30] ss:$0 sm:$0xff] }
 0x8df   : > { %v1806_v9 = vpop.xlane.xlu1 %1805 }
 0x8e0   : > { %v1812_v16 = vadd.f32 %v1806_v9, %v1796_v13 }
 0x8e4   : > { %v1803_v0 = vpop.xlane.xlu0 %1802 }
 0x8e5   : > { %v1811_v22 = vadd.f32 %v1803_v0, %v1795_v19 }
 0x8e8   : > { %v1800_v2 = vpop.xlane.xlu0 %1799 }
 0x8e9   : > { %v1810_v6 = vadd.f32 %v1800_v2, %v1794_v5 }
 0x8eb   : > { %3382 = vrcp.f32 %v1810_v6 }
 0x8ec   : > { %v1361_v18 = vpop.xlane.xlu0 %1360  ;;  %3384 = vrcp.f32 %v1812_v16 }
 0x8ed   : > { %v1365_v7 = vadd.f32 %v1361_v18, %v1349_v63  ;;  %3386 = vrcp.f32 %v1811_v22 }
 0x8ef   : > { %v1797_v30 = vmul.f32 %v3379_v10, %v1365_v7 }
 0x8f0   : > { %v1809_v34 = vpop.xlane.xlu0 %1808 }
 0x8f5   : > { %v3383_v27 = vpop.eup %3382 }
 0x8f6   : > { %v3385_v41 = vpop.eup %3384 }
 0x8f7   : > { %v3387_v45 = vpop.eup %3386 }
 0x91e   : > { %v1864_v20 = vpop.f32.mrb[32].mxu1 }
 0x91f   : > { %v2014_v26 = vadd.f32 %v1864_v20, %v5015_v25  ;;  %v3061_v32 = vpop.f32.mrb[33].mxu1  ;;  %v1813_v25 = vadd.f32 %v1809_v34, %v1797_v30  ;;  %v2896_v34 = vld [vmem:[%s832_s7] ss:$0 sm:$0xff] }
 0x920   : > { %v1867_v28 = vpop.f32.mrb[34].mxu1 }
 0x921   : > { %v2022_v59 = vmul.f32 %v3383_v27, %v2014_v26  ;;  %v3062_v48 = vpop.f32.mrb[35].mxu1  ;;  %3388 = vrcp.f32 %v1813_v25  ;;  %v2897_v25 = vld [vmem:[%s840_s3] ss:$0 sm:$0xff] }
 0x923   : > { %v2026_v47 = vpack.c.bf16 %v2022_v59, %v2022_v59  ;;  %v3340_v59 = vld [vmem:[%s4777_s20] sm:$0xff]  }
 0x925   : > { %3090 = vmatmul.mubr.msk.bf16.vlgmr.msra.gmra.mrb[28].mxu0 %vm1115_vm3, %v2026_v47 }
 0x926   : > { %v1960_v35 = vpop.f32.mrb[36].mxu1  ;;  %3100 = vmatpush3.bf16.msra.mxu0 %v2181_v49  ;;  %3101 = vmatprep.mubr.msk.bf16.mxu0 %vm4029_vm2, %v4028_v11 }
 0x927   : > { %v2016_v38 = vadd.f32 %v1960_v35, %v5033_v46  ;;  %v3073_v39 = vpop.f32.mrb[37].mxu1  ;;  %3113 = vmatprep.subr.bf16.mxu0 %v4028_v11  ;;  %v2132_v46 = vsel %vm2036_vm8, %v2891_v53, 0 }
 0x928   : > { %v1963_v43 = vpop.f32.mrb[38].mxu1 }
 0x929   : > { %v2024_v44 = vmul.f32 %v3385_v41, %v2016_v38  ;;  %v3074_v50 = vpop.f32.mrb[39].mxu1  ;;  %v3341_v43 = vld [vmem:[%s4777_s20 + $0x8] sm:$0xff]  }
 0x92a   : > { %v3343_v50 = vld [vmem:[%s4777_s20 + $0x18] sm:$0xff]  }
 0x92b   : > { %v1912_v51 = vpop.f32.mrb[20].mxu0  ;;  %v2028_v29 = vpack.c.bf16 %v2024_v44, %v2024_v44  ;;  %v3342_v44 = vld [vmem:[%s4777_s20 + $0x10] sm:$0xff]  }
 0x92c   : > { %v2015_v4 = vadd.f32 %v1912_v51, %v5041_v55  ;;  %v3067_v42 = vpop.f32.mrb[21].mxu0  ;;  %v3389_v55 = vpop.eup %3388  ;;  %v3344_v51 = vld [vmem:[%s4777_s20 + $0x20] sm:$0xff]  }
 0x92d   : > { %v1915_v52 = vpop.f32.mrb[22].mxu0  ;;  %v3346_v42 = vld [vmem:[%s4777_s20 + $0x30] sm:$0xff]  }
 0x92e   : > { %v2023_v56 = vmul.f32 %v3387_v45, %v2015_v4  ;;  %v3068_v33 = vpop.f32.mrb[23].mxu0  ;;  %v3345_v4 = vld [vmem:[%s4777_s20 + $0x28] sm:$0xff]   ;;  %v3347_v45 = vld [vmem:[%s4777_s20 + $0x38] sm:$0xff]   ;;  %v2898_v52 = vld [vmem:[%s857_s6] ss:$0 sm:$0xff] }
 0x930   : > { %v2027_v36 = vpack.c.bf16 %v2023_v56, %v2023_v56 }
 0x932   : > { %3084 = vmatmul.mubr.msk.bf16.vlgmr.msra.gmra.mrb[40].mxu1 %vm1115_vm3, %v2027_v36 }
 0x933   : > { %v2008_v12 = vpop.f32.mrb[24].mxu0  ;;  %3094 = vmatpush3.bf16.msra.mxu1 %v2132_v46  ;;  %3095 = vmatprep.mubr.msk.bf16.mxu1 %vm4029_vm2, %v4028_v11 }
 0x934   : > { %v2017_v63 = vadd.f32 %v2008_v12, %v5051_v57  ;;  %v3079_v23 = vpop.f32.mrb[25].mxu0  ;;  %3105 = vmatprep.subr.bf16.mxu1 %v4028_v11 }
 0x935   : > { %v2011_v31 = vpop.f32.mrb[26].mxu0 }
 0x936   : > { %v2025_v10 = vmul.f32 %v3389_v55, %v2017_v63  ;;  %v3080_v17 = vpop.f32.mrb[27].mxu0 }
 0x938   : > { %v2029_v40 = vpack.c.bf16 %v2025_v10, %v2025_v10 }
 0x93a   : > { %3096 = vmatmul.mubr.msk.bf16.vlgmr.msra.gmra.mrb[44].mxu1 %vm1115_vm3, %v2028_v29  ;;  %3102 = vmatmul.mubr.msk.bf16.vlgmr.msra.gmra.mrb[32].mxu0 %vm1115_vm3, %v2029_v40 }
 0x93b   : > { %3109 = vmatprep.mubr.msk.bf16.mxu1 %vm4029_vm2, %v4028_v11  ;;  %3129 = vmatprep.mubr.msk.bf16.mxu0 %vm4029_vm2, %v4028_v11 }
 0x93c   : > { %3106 = vmatpush3.bf16.msra.mxu1 %v3338_v24  ;;  %3114 = vmatpush3.bf16.msra.mxu0 %v3340_v59 }
 0x93d   : > { %3107 = vmatprep.subr.bf16.mxu1 %v4028_v11  ;;  %3115 = vmatprep.subr.bf16.mxu0 %v4028_v11 }
 0x940   : > { %3116 = vmatpush3.bf16.msra.mxu0 %v3341_v43 }
 0x941   : > { %3117 = vmatprep.subr.bf16.mxu0 %v4028_v11 }
 0x944   : > { %3118 = vmatpush3.bf16.msra.mxu0 %v3342_v44 }
 0x945   : > { %3119 = vmatprep.subr.bf16.mxu0 %v4028_v11 }
 0x948   : > { %3120 = vmatpush3.bf16.msra.mxu0 %v3343_v50 }
 0x949   : > { %3121 = vmatprep.subr.bf16.mxu0 %v4028_v11 }
 0x94c   : > { %3122 = vmatpush3.bf16.msra.mxu0 %v3344_v51 }
 0x94d   : > { %3123 = vmatprep.subr.bf16.mxu0 %v4028_v11 }
 0x950   : > { %3124 = vmatpush3.bf16.msra.mxu0 %v3345_v4 }
 0x951   : > { %3125 = vmatprep.subr.bf16.mxu0 %v4028_v11 }
 0x954   : > { %3126 = vmatpush3.bf16.msra.mxu0 %v3346_v42 }
 0x955   : > { %3127 = vmatprep.subr.bf16.mxu0 %v4028_v11 }
 0x958   : > { %3128 = vmatpush3.bf16.msra.mxu0 %v3347_v45 }
 0x9f8   : > { %v2120_v57 = vpop.f32.mrb[28].mxu0 }
 0x9f9   : > { %v3091_v58 = vpop.f32.mrb[29].mxu0 }
 0x9fa   : > { %v2123_v21 = vpop.f32.mrb[30].mxu0 }
 0x9fb   : > { %v3092_v37 = vpop.f32.mrb[31].mxu0 }
 0xa05   : > { %v2074_v60 = vpop.f32.mrb[40].mxu1 }
 0xa06   : > { %v2121_v54 = vadd.f32 %v2120_v57, %v2074_v60  ;;  %v3085_v61 = vpop.f32.mrb[41].mxu1  ;;  %v2902_v57 = vld [vmem:[%s874_s15] ss:$0 sm:$0xff] }
 0xa07   : > { %v2077_v62 = vpop.f32.mrb[42].mxu1 }
 0xa08   : > { %v3086_v0 = vpop.f32.mrb[43].mxu1 }
 0xa0d   : > { %v2168_v1 = vpop.f32.mrb[44].mxu1  ;;  %v2217_v2 = vpop.f32.mrb[32].mxu0 }
 0xa0e   : > { %v2174_v5 = vadd.f32 %v2168_v1, %v2121_v54  ;;  %v3097_v14 = vpop.f32.mrb[45].mxu1  ;;  %v3103_v6 = vpop.f32.mrb[33].mxu0 }
 0xa0f   : > { %v2171_v9 = vpop.f32.mrb[46].mxu1  ;;  %v2220_v13 = vpop.f32.mrb[34].mxu0 }
 0xa10   : > { %v2223_v15 = vadd.f32 %v2217_v2, %v2174_v5  ;;  %v3098_v16 = vpop.f32.mrb[47].mxu1  ;;  %v3104_v18 = vpop.f32.mrb[35].mxu0 }
 0xa11   : > { %v2913_v18 = vld [vmem:[#allocation21] ss:$0 sm:$0xff] (!%p2911_p1) }
 0xa12   : > { %v2231_v19 = vadd.f32 %v2895_v8, %v2223_v15  ;;  %v2912_v15 = vld [vmem:[#allocation20] ss:$0 sm:$0xff] (!%p2911_p1) }
 0xa14   : > { %v5094_v20 = vadd.f32 %v2231_v19, %v4790_v3  ;;  %v3339_v3 = vld [vmem:[%s849_s10 + $0x8] sm:$0xff]  }
 0xa15   : > { %3108 = vmatpush3.bf16.msra.mxu1 %v3339_v3 }
 0xa16   : > { %v2235_v22 = vsel %vm996_vm1, %v5094_v20, 0.0 }
 0xa17   : > { %2236 = vadd.xlane.f32.xlu1 %v2235_v22 }
 0xaa4   : > { %v2237_v7 = vpop.xlane.xlu1 %2236 }
 0xaa5   : > { %v2238_v26 = vmul.f32 0.03125, %v2237_v7 }
 0xaa7   : > { %v2239_v32 = vsub.f32 %v5094_v20, %v2238_v26 }
 0xaa9   : > { %v2240_v27 = vmul.f32 %v2239_v32, %v2239_v32 }
 0xaab   : > { %v2241_v28 = vsel %vm996_vm1, %v2240_v27, 0.0 }
 0xaac   : > { %2242 = vadd.xlane.f32.xlu0 %v2241_v28 }
 0xb39   : > { %v2243_v48 = vpop.xlane.xlu0 %2242 }
 0xb3a   : > { %v2244_v30 = vmul.f32 0.03125, %v2243_v48 }
 0xb3c   : > { %v2245_v47 = vadd.f32 1e-05, %v2244_v30 }
 0xb3e   : > { %3390 = vrsqrt.f32 %v2245_v47 }
 0xb48   : > { %v3391_v49 = vpop.eup %3390 }
 0xb49   : > { %v2247_v35 = vmul.f32 %v3391_v49, %v2239_v32 }
 0xb4b   : > { %v2254_v38 = vmul.f32 %v2896_v34, %v2247_v35 }
 0xb4d   : > { %v2261_v39 = vadd.f32 %v2897_v25, %v2254_v38 }
 0xb4f   : > { %v2262_v41 = vpack.c.bf16 %v2261_v39, %v2261_v39 }
 0xb51   : > { %3110 = vmatmul.mubr.msk.bf16.vlgmr.msra.gmra.mrb[48].mxu1 %vm996_vm1, %v2262_v41 }
 0xc24   : > { %v2323_v53 = vpop.f32.mrb[48].mxu1 }
 0xc25   : > { %v2324_v56 = vadd.f32 %v2898_v52, %v2323_v53  ;;  %v3111_v33 = vpop.f32.mrb[49].mxu1 }
 0xc26   : > { %v2326_v36 = vpop.f32.mrb[50].mxu1 }
 0xc27   : > { %v2330_v46 = vmul.f32 0.044715, %v2324_v56  ;;  %v3112_v12 = vpop.f32.mrb[51].mxu1  ;;  %v2329_v17 = vmul.f32 0.5, %v2324_v56 }
 0xc29   : > { %v2331_v63 = vmul.f32 %v2330_v46, %v2324_v56 }
 0xc2b   : > { %v2332_v23 = vmul.f32 %v2331_v63, %v2324_v56 }
 0xc2d   : > { %v2333_v55 = vadd.f32 %v2332_v23, %v2324_v56 }
 0xc2f   : > { %v2334_v31 = vmul.f32 0.7978846, %v2333_v55 }
 0xc31   : > { %3392 = vtanh.f32 %v2334_v31 }
 0xc3b   : > { %v3393_v10 = vpop.eup %3392 }
 0xc3c   : > { %v2336_v29 = vadd.f32 1.0, %v3393_v10 }
 0xc3e   : > { %v2337_v40 = vmul.f32 %v2336_v29, %v2329_v17 }
 0xc40   : > { %v2338_v11 = vpack.c.bf16 %v2337_v40, %v2337_v40 }
 0xc42   : > { %3130 = vmatmul.mubr.bf16.vlgmr.msra.gmra.mrb[36].mxu0 %v2338_v11 }
 0xd14   : > { %2455 = sbr.rel (%p2911_p1) target bundleno = 3668 (0xe54), region = 156 }
 0xd15   : > { %v2444_v58 = vpop.f32.mrb[36].mxu0 }
 0xd16   : > { %v2445_v21 = vadd.f32 %v2902_v57, %v2444_v58  ;;  %v3131_v37 = vpop.f32.mrb[37].mxu0 }
 0xd17   : > { %v2447_v60 = vpop.f32.mrb[38].mxu0 }
 0xd18   : > { %v2450_v54 = vadd.f32 %v2445_v21, %v5094_v20  ;;  %v3132_v61 = vpop.f32.mrb[39].mxu0 }
 0xd1a   : > { %2451 = vst.msk [vmem:[#allocation2] sm:$0xff] %vm996_vm1, %v2450_v54  ;;  %v2458_v62 = vsel (!%p2911_p1), %vm996_vm1, %v2450_v54, 0.0 }
 0xd1b   : > { %2459 = vadd.xlane.f32.xlu0 %v2458_v62 }
 0xda8   : > { %v2460_v0 = vpop.xlane.xlu0 %2459 }
 0xda9   : > { %v2461_v1 = vmul.f32 0.03125, %v2460_v0 }
 0xdab   : > { %v2462_v2 = vsub.f32 %v2450_v54, %v2461_v1 }
 0xdad   : > { %v2463_v5 = vmul.f32 %v2462_v2, %v2462_v2 }
 0xdaf   : > { %v2464_v14 = vsel %vm996_vm1, %v2463_v5, 0.0 }
 0xdb0   : > { %2465 = vadd.xlane.f32.xlu0 %v2464_v14 }
 0xe3d   : > { %v2466_v6 = vpop.xlane.xlu0 %2465 }
 0xe3e   : > { %v2467_v8 = vmul.f32 0.03125, %v2466_v6 }
 0xe40   : > { %v2468_v9 = vadd.f32 1e-05, %v2467_v8 }
 0xe42   : > { %3394 = vrsqrt.f32 %v2468_v9 }
 0xe4c   : > { %v3395_v13 = vpop.eup %3394 }
 0xe4d   : > { %v2470_v16 = vmul.f32 %v3395_v13, %v2462_v2 }
 0xe4f   : > { %v2477_v19 = vmul.f32 %v2912_v15, %v2470_v16 }
 0xe51   : > { %v2484_v20 = vadd.f32 %v2913_v18, %v2477_v19 }
 0xe53   : > { %2485 = vst.msk [vmem:[%s982_s9] sm:$0xff] %vm996_vm1, %v2484_v20 }
 0xe54 PF: > { %s5349_s21 = sld [smem:[#allocation35_spill]]  ;;  %s5350_s14 = sld [smem:[#allocation42_spill]] }
 0xe55   : > { %s5351_s18 = sld [smem:[#allocation60_spill]]  ;;  %s2500_s30 = sshll.u32 %s982_s9, 4  ;;  %s2501_s30 = int_to_ptr.vmem [resolvable:$true] %s2500_s30 }
 0xe56   : > { %s2487_s7 = scalar_lea.sflag [#allocation5], %s768_s16  ;;  %s3870_s3 = scalar_lea.vmem %s2501_s30, 128 }
 0xe57   : > { %p3871_p0 = scmp.ne.s32.totalorder %s2501_s30, %s3870_s3  ;;  %s4036_s10 = smov [#allocation23]  }
 0xe58   : > { %s3874_s6 = sshll.u32 %s4036_s10, 4  ;;  %s3875_s6 = int_to_ptr.vmem [resolvable:$false] %s3874_s6 }
 0xe59   : > { %s3876_s20 = scalar_lea.vmem %s3875_s6, 256  ;;  %p3877_p4 = scmp.lt.s32.totalorder %s2501_s30, %s3875_s6 }
 0xe5a   : > { %s2915_s23 = sshll.u32 %s5349_s21, 7  ;;  %p5352_p2 = scmp.ne.s32.totalorder %s5350_s14, 0 }
 0xe5b   : > { %s5141_s13 = scalar_lea.hbm %s5351_s18, %s2915_s23  ;;  %p3878_p11 = scmp.lt.s32.totalorder %s3876_s20, %s3870_s3 }
 0xe5c   : > { %p3872_p5 = pnand %p3871_p0, %p5352_p2 }
 0xe5d   : > { %p3879_p3 = por %p3878_p11, %p3877_p4 }
 0xe5e   : > { %p3873_p6 = pneg %p3872_p5 }
 0xe60   : > { %p3880_p13 = pnand %p3879_p3, %p3873_p6 }
 0xe62   : > { %3883 = shalt.err (!%p3880_p13)
}
 0xe63   : > { %s3884_s16 = scalar_lea.hbm %s5141_s13, 128  ;;  %s3888_s9 = scalar_lea.hbm %s5351_s18, 256 }
 0xe64   : > { %p3885_p7 = scmp.ne.s32.totalorder %s5141_s13, %s3884_s16  ;;  %p3889_p9 = scmp.lt.u32.totalorder %s5141_s13, %s5351_s18 }
 0xe65   : > { %p3890_p8 = scmp.lt.u32.totalorder %s3888_s9, %s3884_s16  ;;  %p3892_p0 = scmp.lt.u32.totalorder %s3884_s16, %s5141_s13 }
 0xe66   : > { %p3886_p10 = pnand %p3885_p7, %p5352_p2 }
 0xe67   : > { %p3891_p1 = por %p3890_p8, %p3889_p9 }
 0xe68   : > { %p3887_p12 = pneg %p3886_p10 }
 0xe69   : > { %p3893_p5 = por %p3892_p0, %p3891_p1 }
 0xe6b   : > { %p3894_p6 = pnand %p3893_p5, %p3887_p12 }
 0xe6d   : > { %3897 = shalt.err (!%p3894_p6)
}
 0xe6e   : > { %3171 = dma.vmem_to_hbm [thread:$0]  (%p5352_p2), %s2501_s30, 128, %s5141_s13, %s2487_s7  }
 0xe6f PF: > { %s5353_s27 = sld [smem:[#allocation43_spill]]  ;;  %p3234_p4 = scmp.ge.s32.totalorder %s4008_s0, 2 }
 0xe70   : > { %s2512_s1 = sand.u32 1, %s3980_s24  }
 0xe71   : > { %s2513_s29 = scalar_lea.sflag [#allocation5], %s2512_s1 }
 0xe75   : > { %p5354_p11 = scmp.ne.s32.totalorder %s5353_s27, 0 }
 0xe77   : > { %p3224_p3 = pnand %p3234_p4, %p5354_p11 }
 0xe79   : > { %3963 = dma.done.wait (!%p3224_p3), %s2513_s29, 128  }
 0xe7a   : > { %3965 = vsyncadd (!%p3224_p3), %s2513_s29, 4294967168  ;;  %s34_s0 = sadd.s32 1, %s4008_s0   ;;  %s5355_s21 = sld [smem:[#allocation31_spill]] }
 0xe7b   : > { %p31_p13 = scmp.ge.s32.totalorder %s34_s0, 6   ;;  %s5356_s22 = sld [smem:[#allocation32_spill]] }
 0xe7c   : > { %s5357_s23 = sld [smem:[#allocation40_spill]]  ;;  %s5358_s12 = sld [smem:[#allocation33_spill]] }
 0xe7d   : > { %s5359_s26 = sld [smem:[#allocation41_spill]]  ;;  %s5360_s27 = sld [smem:[#allocation36_spill]] }
 0xe7e   : > { %s5361_s28 = sld [smem:[#allocation37_spill]]  ;;  %s5362_s29 = sld [smem:[#allocation38_spill]] }
 0xe7f   : > { %s5363_s30 = sld [smem:[#allocation39_spill]]  ;;  %s5364_s24 = smov %s3984_s25 }
 0xe80   :  { %33 = sbr.rel (!%p31_p13) target bundleno = 29 (0x1d), region = 284 }
 0xe82   : > { %s5365_s25 = smov %s5358_s12 }
 0xe87   :  { %2518 = vsyncpa [#allocation4], 1 }
 0xe88   :  { %2520 = vsyncpa [#allocation4 + $0x1], 1 }
 0xe89   :  { %2521 = vsyncpa [#allocation7], 1 }
 0xe8a   :  { %2522 = vsyncpa [#allocation22], 1 }
 0xe8b   :  { %2523 = vsyncpa [#allocation5], 1 }
 0xe8c   :  { %2525 = vsyncpa [#allocation5 + $0x1], 1 }

</bundles_post_ra>
